<compile_context>
chip_gen: v7x
topology: tpu7x:2x2x1
jax: 0.10.0
libtpu: 0.0.40
codegen_flags: <defaults>
</compile_context>

<pallas_src>
import jax
import jax.numpy as jnp
from jax.experimental import pallas as pl
from jax.experimental.pallas import tpu as pltpu


def pointnet_seg_kernel(x_ref,
                        w1_ref, t1_ref,
                        w2_ref, t2_ref,
                        w3_ref, t3_ref,
                        w4_ref, b4_ref,
                        o_ref):
    x = x_ref[0]                                                     # (C_in, TN) bf16

    # conv1 (1x1, BN scale pre-folded into W): bf16 MXU pass, f32 accumulation.
    h = jnp.dot(w1_ref[...], x, preferred_element_type=jnp.float32)
    # shift + relu in f32 (v5e has no bf16 VPU); cast to bf16 only at the next
    # matmul operand boundary (halves live-vreg / spill bytes feeding the MXU).
    h = jnp.maximum(h + t1_ref[...], 0.0).astype(jnp.bfloat16)       # (H1, TN)

    # conv2 + shift + relu
    h = jnp.dot(w2_ref[...], h, preferred_element_type=jnp.float32)
    h = jnp.maximum(h + t2_ref[...], 0.0).astype(jnp.bfloat16)       # (H2, TN)

    # conv3 + shift + relu
    h = jnp.dot(w3_ref[...], h, preferred_element_type=jnp.float32)
    h = jnp.maximum(h + t3_ref[...], 0.0).astype(jnp.bfloat16)       # (H3, TN)

    # conv4 -> class logits, rows padded to the 8-sublane width. Padded rows
    # carry a -1e30 bias (kept in f32!) so exp() underflows to 0 below.
    logits = jnp.dot(w4_ref[...], h, preferred_element_type=jnp.float32)
    logits = logits + b4_ref[...]                                     # (kp, TN) f32

    # log_softmax over classes (sublane axis), all f32.
    m = jnp.max(logits, axis=0, keepdims=True)
    z = logits - m
    lse = jnp.log(jnp.sum(jnp.exp(z), axis=0, keepdims=True))
    out = z - lse                                                     # (kp, TN)

    # Full-sublane, lane-dense store: unmasked vst; the wrapper slices the real
    # k class rows back out.
    o_ref[0] = out.astype(o_ref.dtype)


def pointnet_seg(x, params, *, tn=512, min_grid_steps=8):
    """x: (B, C_in, N) float32. params: BN-folded kernel params.
    Returns log-softmax segmentation of shape (B, N, k)."""
    B, C_in, N = x.shape
    (w1, t1, w2, t2, w3, t3, w4, b4) = params
    H1, H2, H3, k = w1.shape[0], w2.shape[0], w3.shape[0], w4.shape[0]

    # Tile selection: largest lane-dense tile that still gives the parallel grid
    # >= min_grid_steps steps (v7x: 2 TCs/chip + pipeline depth; extra steps also
    # hide the ~0.35 us/step overhead).  v6e/v5e lose almost nothing at this size.
    tn = min(tn, N)
    while tn > 128 and B * (N // tn) < min_grid_steps and N % (tn // 2) == 0:
        tn //= 2
    assert N % tn == 0, (N, tn)

    # Pad the tiny final conv to the 8-row sublane width; padded rows get a
    # -1e30 bias so they vanish in the softmax.  b4p MUST stay f32.
    kp = ((k + 7) // 8) * 8
    w4p = jnp.zeros((kp, H3), w4.dtype).at[:k, :].set(w4)
    b4p = jnp.full((kp, 1), jnp.float32(-1e30)).at[:k, :].set(b4)

    # bf16 only at the MXU operand boundary: halves x DMA bytes and weight VMEM.
    bf = jnp.bfloat16
    x_bf = x.astype(bf)
    w1b, w2b, w3b, w4b = w1.astype(bf), w2.astype(bf), w3.astype(bf), w4p.astype(bf)

    def run(weight_pipeline_mode):
        def full_spec(shape):
            # Whole (small) parameter array resident in VMEM for every grid
            # point.  Constant index_map => never re-DMA'd; Buffered(1) drops the
            # unnecessary second buffer (frees VMEM, matters at production widths).
            if weight_pipeline_mode is None:
                return pl.BlockSpec(shape, lambda b, n: (0,) * len(shape))
            return pl.BlockSpec(shape, lambda b, n: (0,) * len(shape),
                                pipeline_mode=weight_pipeline_mode)

        return pl.pallas_call(
            pointnet_seg_kernel,
            out_shape=jax.ShapeDtypeStruct((B, kp, N), jnp.float32),
            grid_spec=pltpu.PrefetchScalarGridSpec(
                num_scalar_prefetch=0,
                grid=(B, N // tn),
                in_specs=[
                    pl.BlockSpec((1, C_in, tn), lambda b, n: (b, 0, n)),   # x tile
                    full_spec((H1, C_in)), full_spec((H1, 1)),
                    full_spec((H2, H1)),  full_spec((H2, 1)),
                    full_spec((H3, H2)),  full_spec((H3, 1)),
                    full_spec((kp, H3)),  full_spec((kp, 1)),
                ],
                # full-sublane, lane-dense output block (kp x tn)
                out_specs=pl.BlockSpec((1, kp, tn), lambda b, n: (b, 0, n)),
            ),
            compiler_params=pltpu.CompilerParams(
                dimension_semantics=("parallel", "parallel")),
        )(x_bf, w1b, t1, w2b, t2, w3b, t3, w4b, b4p)

    try:
        out_bkn = run(pl.Buffered(1))     # single-buffer grid-invariant params
    except Exception:                     # pragma: no cover - jax w/o pipeline_mode
        out_bkn = run(None)               # fall back to default double buffering

    # (B, kp, N) -> (B, N, k): drop sublane padding + transpose (layout plumbing,
    # fuses in XLA outside the kernel).
    return jnp.transpose(out_bkn[:, :k, :], (0, 2, 1))


def make_params(key, c_in, h1, h2, h3, k):
    """Deterministic synthetic raw Conv1d + BatchNorm1d (eval) parameters."""
    ks = jax.random.split(key, 20)

    def conv(kw, kb, co, ci):
        w = 0.1 * jax.random.normal(kw, (co, ci), jnp.float32)
        b = 0.1 * jax.random.normal(kb, (co,), jnp.float32)
        return w, b

    def bn(kg, kb2, km, kv, c):
        gamma = 1.0 + 0.1 * jax.random.normal(kg, (c,), jnp.float32)
        beta = 0.1 * jax.random.normal(kb2, (c,), jnp.float32)
        mean = 0.1 * jax.random.normal(km, (c,), jnp.float32)
        var = jnp.abs(jax.random.normal(kv, (c,), jnp.float32)) + 1.0
        return (gamma, beta, mean, var)

    w1, b1 = conv(ks[0], ks[1], h1, c_in)
    bn1 = bn(ks[2], ks[3], ks[4], ks[5], h1)
    w2, b2 = conv(ks[6], ks[7], h2, h1)
    bn2 = bn(ks[8], ks[9], ks[10], ks[11], h2)
    w3, b3 = conv(ks[12], ks[13], h3, h2)
    bn3 = bn(ks[14], ks[15], ks[16], ks[17], h3)
    w4, b4 = conv(ks[18], ks[19], k, h3)
    return (w1, b1, bn1, w2, b2, bn2, w3, b3, bn3, w4, b4)


def fold_bn_into_conv(raw, eps=1e-5):
    """Fold eval-mode BN into the conv weights: BN(Wx+b) == (s*W) x + t."""
    (w1, b1, bn1, w2, b2, bn2, w3, b3, bn3, w4, b4) = raw

    def fold(w, b, bn_params):
        gamma, beta, mean, var = bn_params
        s = gamma / jnp.sqrt(var + eps)
        return w * s[:, None], (beta + (b - mean) * s).reshape(-1, 1)

    w1f, t1 = fold(w1, b1, bn1)
    w2f, t2 = fold(w2, b2, bn2)
    w3f, t3 = fold(w3, b3, bn3)
    return (w1f, t1, w2f, t2, w3f, t3, w4, b4.reshape(-1, 1))


def reference(x, raw, eps=1e-5):
    """Pure-JAX f32 (HIGHEST precision) reference: conv1x1 + BN(eval) + relu x3,
    conv1x1, transpose, log_softmax — the PyTorch forward semantics."""
    hp = jax.lax.Precision.HIGHEST
    (w1, b1, bn1, w2, b2, bn2, w3, b3, bn3, w4, b4) = raw

    def layer(h, w, b, bn_params):
        gamma, beta, mean, var = bn_params
        y = jnp.einsum('oi,bin->bon', w, h, precision=hp) + b[:, None]
        y = gamma[:, None] * (y - mean[:, None]) / jnp.sqrt(var[:, None] + eps) \
            + beta[:, None]
        return jnp.maximum(y, 0.0)

    h = layer(x, w1, b1, bn1)
    h = layer(h, w2, b2, bn2)
    h = layer(h, w3, b3, bn3)
    logits = jnp.einsum('oi,bin->bon', w4, h, precision=hp) + b4[:, None]  # (B, k, N)
    logits = jnp.transpose(logits, (0, 2, 1))                              # (B, N, k)
    return jax.nn.log_softmax(logits, axis=-1)


if __name__ == "__main__":
    key = jax.random.PRNGKey(0)
    kx, kparam = jax.random.split(key)

    # Shapes consistent with the module: x is (B, d+64, N) with d=32.
    B, d, N, k = 2, 32, 1024, 2
    C_in = d + 64                        # 96
    H1, H2, H3 = 128, 64, 32             # segmentation-head MLP widths (scaled down)

    x = jax.random.normal(kx, (B, C_in, N), jnp.float32)
    raw_params = make_params(kparam, C_in, H1, H2, H3, k)
    params = fold_bn_into_conv(raw_params)

    out = pointnet_seg(x, params, tn=512)
    out = jax.block_until_ready(out)

    ref = reference(x, raw_params)
    assert out.shape == (B, N, k), out.shape
    assert bool(jnp.all(jnp.isfinite(out)))
    # Kernel runs bf16 MXU operands (f32 accumulation) vs. an f32 HIGHEST reference.
    err = float(jnp.max(jnp.abs(out - ref)))
    assert bool(jnp.allclose(out, ref, atol=5e-2, rtol=5e-2)), err
    print("KERNEL_OK")
</pallas_src>

<mosaic_0001>
module attributes {stable_mosaic.version = 11 : i64} {
  func.func @pointnet_seg_kernel(%arg0: i32, %arg1: i32, %arg2: memref<1x96x256xbf16, #tpu.memory_space<vmem>>, %arg3: memref<128x96xbf16, #tpu.memory_space<vmem>>, %arg4: memref<128x1xf32, #tpu.memory_space<vmem>>, %arg5: memref<64x128xbf16, #tpu.memory_space<vmem>>, %arg6: memref<64x1xf32, #tpu.memory_space<vmem>>, %arg7: memref<32x64xbf16, #tpu.memory_space<vmem>>, %arg8: memref<32x1xf32, #tpu.memory_space<vmem>>, %arg9: memref<8x32xbf16, #tpu.memory_space<vmem>>, %arg10: memref<8x1xf32, #tpu.memory_space<vmem>>, %arg11: memref<1x8x256xf32, #tpu.memory_space<vmem>>) attributes {dimension_semantics = [#tpu.dimension_semantics<parallel>, #tpu.dimension_semantics<parallel>], iteration_bounds = array<i64: 2, 4>, scalar_prefetch = 0 : i64, scratch_operands = 0 : i64, tpu.core_type = #tpu.core_type<tc>, window_params = [{transform_indices = @transform_0, window_bounds = array<i64: 1, 96, 256>}, {pipeline_mode = #tpu.pipeline_mode<synchronous>, transform_indices = @transform_1, window_bounds = array<i64: 128, 96>}, {pipeline_mode = #tpu.pipeline_mode<synchronous>, transform_indices = @transform_2, window_bounds = array<i64: 128, 1>}, {pipeline_mode = #tpu.pipeline_mode<synchronous>, transform_indices = @transform_3, window_bounds = array<i64: 64, 128>}, {pipeline_mode = #tpu.pipeline_mode<synchronous>, transform_indices = @transform_4, window_bounds = array<i64: 64, 1>}, {pipeline_mode = #tpu.pipeline_mode<synchronous>, transform_indices = @transform_5, window_bounds = array<i64: 32, 64>}, {pipeline_mode = #tpu.pipeline_mode<synchronous>, transform_indices = @transform_6, window_bounds = array<i64: 32, 1>}, {pipeline_mode = #tpu.pipeline_mode<synchronous>, transform_indices = @transform_7, window_bounds = array<i64: 8, 32>}, {pipeline_mode = #tpu.pipeline_mode<synchronous>, transform_indices = @transform_8, window_bounds = array<i64: 8, 1>}, {transform_indices = @transform_9, window_bounds = array<i64: 1, 8, 256>}]} {
    %c0 = arith.constant 0 : index
    %c0_0 = arith.constant 0 : index
    %c0_1 = arith.constant 0 : index
    %0 = vector.load %arg2[%c0, %c0_0, %c0_1] : memref<1x96x256xbf16, #tpu.memory_space<vmem>>, vector<1x96x256xbf16>
    %1 = vector.shape_cast %0 : vector<1x96x256xbf16> to vector<96x256xbf16>
    %c0_2 = arith.constant 0 : index
    %c0_3 = arith.constant 0 : index
    %2 = vector.load %arg3[%c0_2, %c0_3] : memref<128x96xbf16, #tpu.memory_space<vmem>>, vector<128x96xbf16>
    %cst = arith.constant dense<0.000000e+00> : vector<128x256xf32>
    %3 = tpu.matmul %2, %1, %cst {dimension_numbers = #tpu.dot_dimension_numbers<[1], [0], [0], [1], [0, 0, 1, 1], [], []>} : vector<128x96xbf16>, vector<96x256xbf16>, vector<128x256xf32> -> vector<128x256xf32>
    %c0_4 = arith.constant 0 : index
    %c0_5 = arith.constant 0 : index
    %4 = vector.load %arg4[%c0_4, %c0_5] : memref<128x1xf32, #tpu.memory_space<vmem>>, vector<128x1xf32>
    %5 = vector.broadcast %4 : vector<128x1xf32> to vector<128x256xf32>
    %6 = arith.addf %3, %5 : vector<128x256xf32>
    %cst_6 = arith.constant 0.000000e+00 : f32
    %7 = vector.broadcast %cst_6 : f32 to vector<128x256xf32>
    %8 = arith.maximumf %6, %7 : vector<128x256xf32>
    %9 = arith.truncf %8 : vector<128x256xf32> to vector<128x256xbf16>
    %c0_7 = arith.constant 0 : index
    %c0_8 = arith.constant 0 : index
    %10 = vector.load %arg5[%c0_7, %c0_8] : memref<64x128xbf16, #tpu.memory_space<vmem>>, vector<64x128xbf16>
    %cst_9 = arith.constant dense<0.000000e+00> : vector<64x256xf32>
    %11 = tpu.matmul %10, %9, %cst_9 {dimension_numbers = #tpu.dot_dimension_numbers<[1], [0], [0], [1], [0, 0, 1, 1], [], []>} : vector<64x128xbf16>, vector<128x256xbf16>, vector<64x256xf32> -> vector<64x256xf32>
    %c0_10 = arith.constant 0 : index
    %c0_11 = arith.constant 0 : index
    %12 = vector.load %arg6[%c0_10, %c0_11] : memref<64x1xf32, #tpu.memory_space<vmem>>, vector<64x1xf32>
    %13 = vector.broadcast %12 : vector<64x1xf32> to vector<64x256xf32>
    %14 = arith.addf %11, %13 : vector<64x256xf32>
    %cst_12 = arith.constant 0.000000e+00 : f32
    %15 = vector.broadcast %cst_12 : f32 to vector<64x256xf32>
    %16 = arith.maximumf %14, %15 : vector<64x256xf32>
    %17 = arith.truncf %16 : vector<64x256xf32> to vector<64x256xbf16>
    %c0_13 = arith.constant 0 : index
    %c0_14 = arith.constant 0 : index
    %18 = vector.load %arg7[%c0_13, %c0_14] : memref<32x64xbf16, #tpu.memory_space<vmem>>, vector<32x64xbf16>
    %cst_15 = arith.constant dense<0.000000e+00> : vector<32x256xf32>
    %19 = tpu.matmul %18, %17, %cst_15 {dimension_numbers = #tpu.dot_dimension_numbers<[1], [0], [0], [1], [0, 0, 1, 1], [], []>} : vector<32x64xbf16>, vector<64x256xbf16>, vector<32x256xf32> -> vector<32x256xf32>
    %c0_16 = arith.constant 0 : index
    %c0_17 = arith.constant 0 : index
    %20 = vector.load %arg8[%c0_16, %c0_17] : memref<32x1xf32, #tpu.memory_space<vmem>>, vector<32x1xf32>
    %21 = vector.broadcast %20 : vector<32x1xf32> to vector<32x256xf32>
    %22 = arith.addf %19, %21 : vector<32x256xf32>
    %cst_18 = arith.constant 0.000000e+00 : f32
    %23 = vector.broadcast %cst_18 : f32 to vector<32x256xf32>
    %24 = arith.maximumf %22, %23 : vector<32x256xf32>
    %25 = arith.truncf %24 : vector<32x256xf32> to vector<32x256xbf16>
    %c0_19 = arith.constant 0 : index
    %c0_20 = arith.constant 0 : index
    %26 = vector.load %arg9[%c0_19, %c0_20] : memref<8x32xbf16, #tpu.memory_space<vmem>>, vector<8x32xbf16>
    %cst_21 = arith.constant dense<0.000000e+00> : vector<8x256xf32>
    %27 = tpu.matmul %26, %25, %cst_21 {dimension_numbers = #tpu.dot_dimension_numbers<[1], [0], [0], [1], [0, 0, 1, 1], [], []>} : vector<8x32xbf16>, vector<32x256xbf16>, vector<8x256xf32> -> vector<8x256xf32>
    %c0_22 = arith.constant 0 : index
    %c0_23 = arith.constant 0 : index
    %28 = vector.load %arg10[%c0_22, %c0_23] : memref<8x1xf32, #tpu.memory_space<vmem>>, vector<8x1xf32>
    %29 = vector.broadcast %28 : vector<8x1xf32> to vector<8x256xf32>
    %30 = arith.addf %27, %29 : vector<8x256xf32>
    %cst_24 = arith.constant dense<0xFF800000> : vector<256xf32>
    %31 = vector.multi_reduction <maximumf>, %30, %cst_24 [0] : vector<8x256xf32> to vector<256xf32>
    %32 = vector.shape_cast %31 : vector<256xf32> to vector<1x256xf32>
    %33 = vector.broadcast %32 : vector<1x256xf32> to vector<8x256xf32>
    %34 = arith.subf %30, %33 : vector<8x256xf32>
    %35 = math.exp %34 : vector<8x256xf32>
    %cst_25 = arith.constant dense<0.000000e+00> : vector<256xf32>
    %36 = vector.multi_reduction <add>, %35, %cst_25 [0] : vector<8x256xf32> to vector<256xf32>
    %37 = vector.shape_cast %36 : vector<256xf32> to vector<1x256xf32>
    %38 = math.log %37 : vector<1x256xf32>
    %39 = vector.broadcast %38 : vector<1x256xf32> to vector<8x256xf32>
    %40 = arith.subf %34, %39 : vector<8x256xf32>
    %c0_26 = arith.constant 0 : index
    %c0_27 = arith.constant 0 : index
    %c0_28 = arith.constant 0 : index
    %41 = vector.load %arg11[%c0_26, %c0_27, %c0_28] : memref<1x8x256xf32, #tpu.memory_space<vmem>>, vector<1x8x256xf32>
    %42 = vector.shape_cast %41 : vector<1x8x256xf32> to vector<8x256xf32>
    %43 = vector.shape_cast %40 : vector<8x256xf32> to vector<1x8x256xf32>
    tpu.vector_store %arg11[%c0_26, %c0_27, %c0_28], %43 {strides = array<i32>} : memref<1x8x256xf32, #tpu.memory_space<vmem>>, vector<1x8x256xf32>,
    return
  }
  func.func @transform_0(%arg0: i32, %arg1: i32) -> (i32, i32, i32) {
    %c0_i32 = arith.constant 0 : i32
    %c0_i32_0 = arith.constant 0 : i32
    return %arg0, %c0_i32, %arg1 : i32, i32, i32
  }
  func.func @transform_1(%arg0: i32, %arg1: i32) -> (i32, i32) {
    %c0_i32 = arith.constant 0 : i32
    %c0_i32_0 = arith.constant 0 : i32
    %c0_i32_1 = arith.constant 0 : i32
    return %c0_i32, %c0_i32_0 : i32, i32
  }
  func.func @transform_2(%arg0: i32, %arg1: i32) -> (i32, i32) {
    %c0_i32 = arith.constant 0 : i32
    %c0_i32_0 = arith.constant 0 : i32
    %c0_i32_1 = arith.constant 0 : i32
    return %c0_i32, %c0_i32_0 : i32, i32
  }
  func.func @transform_3(%arg0: i32, %arg1: i32) -> (i32, i32) {
    %c0_i32 = arith.constant 0 : i32
    %c0_i32_0 = arith.constant 0 : i32
    %c0_i32_1 = arith.constant 0 : i32
    return %c0_i32, %c0_i32_0 : i32, i32
  }
  func.func @transform_4(%arg0: i32, %arg1: i32) -> (i32, i32) {
    %c0_i32 = arith.constant 0 : i32
    %c0_i32_0 = arith.constant 0 : i32
    %c0_i32_1 = arith.constant 0 : i32
    return %c0_i32, %c0_i32_0 : i32, i32
  }
  func.func @transform_5(%arg0: i32, %arg1: i32) -> (i32, i32) {
    %c0_i32 = arith.constant 0 : i32
    %c0_i32_0 = arith.constant 0 : i32
    %c0_i32_1 = arith.constant 0 : i32
    return %c0_i32, %c0_i32_0 : i32, i32
  }
  func.func @transform_6(%arg0: i32, %arg1: i32) -> (i32, i32) {
    %c0_i32 = arith.constant 0 : i32
    %c0_i32_0 = arith.constant 0 : i32
    %c0_i32_1 = arith.constant 0 : i32
    return %c0_i32, %c0_i32_0 : i32, i32
  }
  func.func @transform_7(%arg0: i32, %arg1: i32) -> (i32, i32) {
    %c0_i32 = arith.constant 0 : i32
    %c0_i32_0 = arith.constant 0 : i32
    %c0_i32_1 = arith.constant 0 : i32
    return %c0_i32, %c0_i32_0 : i32, i32
  }
  func.func @transform_8(%arg0: i32, %arg1: i32) -> (i32, i32) {
    %c0_i32 = arith.constant 0 : i32
    %c0_i32_0 = arith.constant 0 : i32
    %c0_i32_1 = arith.constant 0 : i32
    return %c0_i32, %c0_i32_0 : i32, i32
  }
  func.func @transform_9(%arg0: i32, %arg1: i32) -> (i32, i32, i32) {
    %c0_i32 = arith.constant 0 : i32
    %c0_i32_0 = arith.constant 0 : i32
    return %arg0, %c0_i32, %arg1 : i32, i32, i32
  }
}

module attributes {stable_mosaic.version = 11 : i64} {
  func.func @pointnet_seg_kernel(%arg0: i32, %arg1: i32, %arg2: memref<1x96x256xbf16, #tpu.memory_space<vmem>>, %arg3: memref<128x96xbf16, #tpu.memory_space<vmem>>, %arg4: memref<128x1xf32, #tpu.memory_space<vmem>>, %arg5: memref<64x128xbf16, #tpu.memory_space<vmem>>, %arg6: memref<64x1xf32, #tpu.memory_space<vmem>>, %arg7: memref<32x64xbf16, #tpu.memory_space<vmem>>, %arg8: memref<32x1xf32, #tpu.memory_space<vmem>>, %arg9: memref<8x32xbf16, #tpu.memory_space<vmem>>, %arg10: memref<8x1xf32, #tpu.memory_space<vmem>>, %arg11: memref<1x8x256xf32, #tpu.memory_space<vmem>>) attributes {dimension_semantics = [#tpu.dimension_semantics<parallel>, #tpu.dimension_semantics<parallel>], iteration_bounds = array<i64: 2, 4>, scalar_prefetch = 0 : i64, scratch_operands = 0 : i64, tpu.core_type = #tpu.core_type<tc>, window_params = [{transform_indices = @transform_0, window_bounds = array<i64: 1, 96, 256>}, {pipeline_mode = #tpu.pipeline_mode<synchronous>, transform_indices = @transform_1, window_bounds = array<i64: 128, 96>}, {pipeline_mode = #tpu.pipeline_mode<synchronous>, transform_indices = @transform_2, window_bounds = array<i64: 128, 1>}, {pipeline_mode = #tpu.pipeline_mode<synchronous>, transform_indices = @transform_3, window_bounds = array<i64: 64, 128>}, {pipeline_mode = #tpu.pipeline_mode<synchronous>, transform_indices = @transform_4, window_bounds = array<i64: 64, 1>}, {pipeline_mode = #tpu.pipeline_mode<synchronous>, transform_indices = @transform_5, window_bounds = array<i64: 32, 64>}, {pipeline_mode = #tpu.pipeline_mode<synchronous>, transform_indices = @transform_6, window_bounds = array<i64: 32, 1>}, {pipeline_mode = #tpu.pipeline_mode<synchronous>, transform_indices = @transform_7, window_bounds = array<i64: 8, 32>}, {pipeline_mode = #tpu.pipeline_mode<synchronous>, transform_indices = @transform_8, window_bounds = array<i64: 8, 1>}, {transform_indices = @transform_9, window_bounds = array<i64: 1, 8, 256>}]} {
    %c0 = arith.constant 0 : index
    %c0_0 = arith.constant 0 : index
    %c0_1 = arith.constant 0 : index
    %0 = vector.load %arg2[%c0, %c0_0, %c0_1] : memref<1x96x256xbf16, #tpu.memory_space<vmem>>, vector<1x96x256xbf16>
    %1 = vector.shape_cast %0 : vector<1x96x256xbf16> to vector<96x256xbf16>
    %c0_2 = arith.constant 0 : index
    %c0_3 = arith.constant 0 : index
    %2 = vector.load %arg3[%c0_2, %c0_3] : memref<128x96xbf16, #tpu.memory_space<vmem>>, vector<128x96xbf16>
    %cst = arith.constant dense<0.000000e+00> : vector<128x256xf32>
    %3 = tpu.matmul %2, %1, %cst {dimension_numbers = #tpu.dot_dimension_numbers<[1], [0], [0], [1], [0, 0, 1, 1], [], []>} : vector<128x96xbf16>, vector<96x256xbf16>, vector<128x256xf32> -> vector<128x256xf32>
    %c0_4 = arith.constant 0 : index
    %c0_5 = arith.constant 0 : index
    %4 = vector.load %arg4[%c0_4, %c0_5] : memref<128x1xf32, #tpu.memory_space<vmem>>, vector<128x1xf32>
    %5 = vector.broadcast %4 : vector<128x1xf32> to vector<128x256xf32>
    %6 = arith.addf %3, %5 : vector<128x256xf32>
    %cst_6 = arith.constant 0.000000e+00 : f32
    %7 = vector.broadcast %cst_6 : f32 to vector<128x256xf32>
    %8 = arith.maximumf %6, %7 : vector<128x256xf32>
    %9 = arith.truncf %8 : vector<128x256xf32> to vector<128x256xbf16>
    %c0_7 = arith.constant 0 : index
    %c0_8 = arith.constant 0 : index
    %10 = vector.load %arg5[%c0_7, %c0_8] : memref<64x128xbf16, #tpu.memory_space<vmem>>, vector<64x128xbf16>
    %cst_9 = arith.constant dense<0.000000e+00> : vector<64x256xf32>
    %11 = tpu.matmul %10, %9, %cst_9 {dimension_numbers = #tpu.dot_dimension_numbers<[1], [0], [0], [1], [0, 0, 1, 1], [], []>} : vector<64x128xbf16>, vector<128x256xbf16>, vector<64x256xf32> -> vector<64x256xf32>
    %c0_10 = arith.constant 0 : index
    %c0_11 = arith.constant 0 : index
    %12 = vector.load %arg6[%c0_10, %c0_11] : memref<64x1xf32, #tpu.memory_space<vmem>>, vector<64x1xf32>
    %13 = vector.broadcast %12 : vector<64x1xf32> to vector<64x256xf32>
    %14 = arith.addf %11, %13 : vector<64x256xf32>
    %cst_12 = arith.constant 0.000000e+00 : f32
    %15 = vector.broadcast %cst_12 : f32 to vector<64x256xf32>
    %16 = arith.maximumf %14, %15 : vector<64x256xf32>
    %17 = arith.truncf %16 : vector<64x256xf32> to vector<64x256xbf16>
    %c0_13 = arith.constant 0 : index
    %c0_14 = arith.constant 0 : index
    %18 = vector.load %arg7[%c0_13, %c0_14] : memref<32x64xbf16, #tpu.memory_space<vmem>>, vector<32x64xbf16>
    %cst_15 = arith.constant dense<0.000000e+00> : vector<32x256xf32>
    %19 = tpu.matmul %18, %17, %cst_15 {dimension_numbers = #tpu.dot_dimension_numbers<[1], [0], [0], [1], [0, 0, 1, 1], [], []>} : vector<32x64xbf16>, vector<64x256xbf16>, vector<32x256xf32> -> vector<32x256xf32>
    %c0_16 = arith.constant 0 : index
    %c0_17 = arith.constant 0 : index
    %20 = vector.load %arg8[%c0_16, %c0_17] : memref<32x1xf32, #tpu.memory_space<vmem>>, vector<32x1xf32>
    %21 = vector.broadcast %20 : vector<32x1xf32> to vector<32x256xf32>
    %22 = arith.addf %19, %21 : vector<32x256xf32>
    %cst_18 = arith.constant 0.000000e+00 : f32
    %23 = vector.broadcast %cst_18 : f32 to vector<32x256xf32>
    %24 = arith.maximumf %22, %23 : vector<32x256xf32>
    %25 = arith.truncf %24 : vector<32x256xf32> to vector<32x256xbf16>
    %c0_19 = arith.constant 0 : index
    %c0_20 = arith.constant 0 : index
    %26 = vector.load %arg9[%c0_19, %c0_20] : memref<8x32xbf16, #tpu.memory_space<vmem>>, vector<8x32xbf16>
    %cst_21 = arith.constant dense<0.000000e+00> : vector<8x256xf32>
    %27 = tpu.matmul %26, %25, %cst_21 {dimension_numbers = #tpu.dot_dimension_numbers<[1], [0], [0], [1], [0, 0, 1, 1], [], []>} : vector<8x32xbf16>, vector<32x256xbf16>, vector<8x256xf32> -> vector<8x256xf32>
    %c0_22 = arith.constant 0 : index
    %c0_23 = arith.constant 0 : index
    %28 = vector.load %arg10[%c0_22, %c0_23] : memref<8x1xf32, #tpu.memory_space<vmem>>, vector<8x1xf32>
    %29 = vector.broadcast %28 : vector<8x1xf32> to vector<8x256xf32>
    %30 = arith.addf %27, %29 : vector<8x256xf32>
    %cst_24 = arith.constant dense<0xFF800000> : vector<256xf32>
    %31 = vector.multi_reduction <maximumf>, %30, %cst_24 [0] : vector<8x256xf32> to vector<256xf32>
    %32 = vector.shape_cast %31 : vector<256xf32> to vector<1x256xf32>
    %33 = vector.broadcast %32 : vector<1x256xf32> to vector<8x256xf32>
    %34 = arith.subf %30, %33 : vector<8x256xf32>
    %35 = math.exp %34 : vector<8x256xf32>
    %cst_25 = arith.constant dense<0.000000e+00> : vector<256xf32>
    %36 = vector.multi_reduction <add>, %35, %cst_25 [0] : vector<8x256xf32> to vector<256xf32>
    %37 = vector.shape_cast %36 : vector<256xf32> to vector<1x256xf32>
    %38 = math.log %37 : vector<1x256xf32>
    %39 = vector.broadcast %38 : vector<1x256xf32> to vector<8x256xf32>
    %40 = arith.subf %34, %39 : vector<8x256xf32>
    %c0_26 = arith.constant 0 : index
    %c0_27 = arith.constant 0 : index
    %c0_28 = arith.constant 0 : index
    %41 = vector.load %arg11[%c0_26, %c0_27, %c0_28] : memref<1x8x256xf32, #tpu.memory_space<vmem>>, vector<1x8x256xf32>
    %42 = vector.shape_cast %41 : vector<1x8x256xf32> to vector<8x256xf32>
    %43 = vector.shape_cast %40 : vector<8x256xf32> to vector<1x8x256xf32>
    tpu.vector_store %arg11[%c0_26, %c0_27, %c0_28], %43 {strides = array<i32>} : memref<1x8x256xf32, #tpu.memory_space<vmem>>, vector<1x8x256xf32>,
    return
  }
  func.func @transform_0(%arg0: i32, %arg1: i32) -> (i32, i32, i32) {
    %c0_i32 = arith.constant 0 : i32
    %c0_i32_0 = arith.constant 0 : i32
    return %arg0, %c0_i32, %arg1 : i32, i32, i32
  }
  func.func @transform_1(%arg0: i32, %arg1: i32) -> (i32, i32) {
    %c0_i32 = arith.constant 0 : i32
    %c0_i32_0 = arith.constant 0 : i32
    %c0_i32_1 = arith.constant 0 : i32
    return %c0_i32, %c0_i32_0 : i32, i32
  }
  func.func @transform_2(%arg0: i32, %arg1: i32) -> (i32, i32) {
    %c0_i32 = arith.constant 0 : i32
    %c0_i32_0 = arith.constant 0 : i32
    %c0_i32_1 = arith.constant 0 : i32
    return %c0_i32, %c0_i32_0 : i32, i32
  }
  func.func @transform_3(%arg0: i32, %arg1: i32) -> (i32, i32) {
    %c0_i32 = arith.constant 0 : i32
    %c0_i32_0 = arith.constant 0 : i32
    %c0_i32_1 = arith.constant 0 : i32
    return %c0_i32, %c0_i32_0 : i32, i32
  }
  func.func @transform_4(%arg0: i32, %arg1: i32) -> (i32, i32) {
    %c0_i32 = arith.constant 0 : i32
    %c0_i32_0 = arith.constant 0 : i32
    %c0_i32_1 = arith.constant 0 : i32
    return %c0_i32, %c0_i32_0 : i32, i32
  }
  func.func @transform_5(%arg0: i32, %arg1: i32) -> (i32, i32) {
    %c0_i32 = arith.constant 0 : i32
    %c0_i32_0 = arith.constant 0 : i32
    %c0_i32_1 = arith.constant 0 : i32
    return %c0_i32, %c0_i32_0 : i32, i32
  }
  func.func @transform_6(%arg0: i32, %arg1: i32) -> (i32, i32) {
    %c0_i32 = arith.constant 0 : i32
    %c0_i32_0 = arith.constant 0 : i32
    %c0_i32_1 = arith.constant 0 : i32
    return %c0_i32, %c0_i32_0 : i32, i32
  }
  func.func @transform_7(%arg0: i32, %arg1: i32) -> (i32, i32) {
    %c0_i32 = arith.constant 0 : i32
    %c0_i32_0 = arith.constant 0 : i32
    %c0_i32_1 = arith.constant 0 : i32
    return %c0_i32, %c0_i32_0 : i32, i32
  }
  func.func @transform_8(%arg0: i32, %arg1: i32) -> (i32, i32) {
    %c0_i32 = arith.constant 0 : i32
    %c0_i32_0 = arith.constant 0 : i32
    %c0_i32_1 = arith.constant 0 : i32
    return %c0_i32, %c0_i32_0 : i32, i32
  }
  func.func @transform_9(%arg0: i32, %arg1: i32) -> (i32, i32, i32) {
    %c0_i32 = arith.constant 0 : i32
    %c0_i32_0 = arith.constant 0 : i32
    return %arg0, %c0_i32, %arg1 : i32, i32, i32
  }
}

</mosaic_0001>

<bundles_post_ra>
// kernel: tpu_custom_call.1
= control target key start
LH: loop header
LB: loop body
LE: loop exit
PB: predicated region body
PF: predicated region fallthrough
CT: control target
= control target key end

     0   :  { %s1994_s0 = inlined_call_operand.hbm [shape: bf16[2,96,1024], index: 0, kind: input, shape index: {}]   ;;  %s1995_s1 = inlined_call_operand.vmem [shape: bf16[128,96], index: 1, kind: input, shape index: {}]   ;;  %s1996_s2 = inlined_call_operand.vmem [shape: f32[128,1], index: 2, kind: input, shape index: {}]   ;;  %s1997_s3 = inlined_call_operand.vmem [shape: bf16[64,128], index: 3, kind: input, shape index: {}]   ;;  %s1998_s4 = inlined_call_operand.vmem [shape: f32[64,1], index: 4, kind: input, shape index: {}]   ;;  %s1999_s5 = inlined_call_operand.vmem [shape: bf16[32,64], index: 5, kind: input, shape index: {}]   ;;  %s2000_s6 = inlined_call_operand.vmem [shape: f32[32,1], index: 6, kind: input, shape index: {}]   ;;  %s2001_s7 = inlined_call_operand.vmem [shape: bf16[8,32], index: 7, kind: input, shape index: {}]   ;;  %s2002_s8 = inlined_call_operand.vmem [shape: f32[8,1], index: 8, kind: input, shape index: {}]   ;;  %s2003_s9 = inlined_call_operand.hbm [shape: f32[2,8,1024], index: 9, kind: output, shape index: {}]  }
   0x1   :  { %2011 = sst [smem:[#allocation14_spill]] %s2003_s9 }
   0x2   :  { %14 = vsyncpa [#allocation3], 0 }
   0x3   :  { %16 = vsyncpa [#allocation3 + $0x1], 0 }
   0x4   :  { %17 = vsyncpa [#allocation4], 0 }
   0x5   :  { %19 = vsyncpa [#allocation4 + $0x1], 0  ;;  %s1627_s30 = smov 0   ;;  %s1629_s10 = smov 0  }
   0x6   :  { %s1631_s11 = smov 0   ;;  %s1633_s12 = smov 0  }
   0x7   :  { %s1635_s13 = smov 0   ;;  %s1637_s14 = smov 0  }
   0x8   :  { %s1639_s15 = smov 0   ;;  %s1641_s16 = smov 0  }
   0x9 LB: > { %2012 = sst [smem:[#allocation8_spill]] %s1541_s30  ;;  %s1263_s17 = sadd.s32 4294967295, %s1569_s16   ;;  %s1569_s16 = sphi %s1641_s16, %s25_s16   ;;  %s1565_s15 = sphi %s1639_s15, %s2032_s15   ;;  %s1561_s14 = sphi %s1637_s14, %s2037_s14   ;;  %s1557_s13 = sphi %s1635_s13, %s2030_s13   ;;  %s1553_s12 = sphi %s1633_s12, %s2036_s12   ;;  %s1549_s11 = sphi %s1631_s11, %s2035_s11   ;;  %s1545_s10 = sphi %s1629_s10, %s2034_s10   ;;  %s1541_s30 = sphi %s1627_s30, %s2033_s30  }
   0xa   : > { %2013 = sst [smem:[#allocation9_spill]] %s1557_s13  ;;  %s1264_s18 = sadd.s32 4294967294, %s1569_s16  }
   0xb   : > { %2014 = sst [smem:[#allocation10_spill]] %s1565_s15  ;;  %s34_s19 = sadd.s32 1, %s1561_s14 }
   0xc   : > { %s37_s20 = sadd.s32 1, %s1565_s15  ;;  %p35_p0 = scmp.ge.s32.totalorder %s34_s19, 4 }
   0xd   : > { %s46_s21 = sadd.s32 1, %s1549_s11  ;;  %p53_p1 = scmp.ne.s32.totalorder %s1549_s11, %s1545_s10 }
   0xe   : > { %p54_p2 = scmp.eq.s32.totalorder %s1569_s16, 0  ;;  %s2039_s19 = smov (%p35_p0, %s34_s19), 0 }
   0xf   : > { %2015 = sst [smem:[#allocation11_spill]] %s2039_s19  ;;  %s2041_s20 = smov (!%p35_p0, %s37_s20), %s1565_s15 }
  0x10   : > { %s42_s22 = ssub.s32 %s1561_s14, %s2039_s19  ;;  %p1680_p3 = por %p54_p2, %p53_p1 }
  0x11   : > { %p39_p4 = scmp.ge.s32.totalorder %s2041_s20, 2  ;;  %p59_p5 = scmp.ne.s32.totalorder %s1545_s10, %s1541_s30 }
  0x12   : > { %p60_p6 = scmp.eq.s32.totalorder %s1263_s17, 0  ;;  %p253_p7 = scmp.eq.s32.totalorder %s1263_s17, 7 }
  0x13   : > { %s2043_s20 = smov (%p39_p4, %s2041_s20), 0  ;;  %p259_p10 = scmp.eq.s32.totalorder %s1264_s18, 7 }
  0x14   : > { %2017 = sst [smem:[#allocation12_spill]] %s2043_s20  ;;  %p1688_p8 = por %p60_p6, %p59_p5 }
  0x15   : > { %p1692_p9 = por %p253_p7, %p53_p1  ;;  %s41_s26 = ssub.s32 %s1565_s15, %s2043_s20 }
  0x16   : > { %s43_s27 = sor.u32 %s42_s22, %s41_s26  ;;  %p1698_p12 = por %p259_p10, %p59_p5 }
  0x17   : > { %s2019_s25 = scalar_select %p1692_p9, 1, 0 }
  0x18   : > { %p44_p11 = scmp.eq.s32.totalorder %s43_s27, 0  ;;  %p1329_p13 = scmp.lt.s32.totalorder %s1569_s16, 8 }
  0x19   : > { %s2020_s28 = scalar_select %p1698_p12, 1, 0 }
  0x1a   : > { %s303_s29 = sand.u32 1, %s1549_s11   ;;  %s1267_s30 = sshll.u32 %s1561_s14, 1 }
  0x1b   : > { %2021 = sst [smem:[#allocation13_spill]] %s2020_s28  ;;  %s1314_s19 = smul.u32 96, %s303_s29 }
  0x1c   : > { %s1705_s17 = scalar_select %p44_p11, %s1549_s11, %s46_s21  }
  0x1d   : > { %s1315_s9 = smul.u32 96, %s1565_s15  ;;  %p1711_p0 = pnand %p1329_p13, %p1680_p3 }
  0x1e   : > { %s307_s22 = scalar_lea.vmem [#allocation2], %s1314_s19  ;;  %s1723_s23 = scalar_lea.sflag [#allocation3], %s303_s29 }
  0x1f   : > { %s313_s18 = sadd.s32 %s1315_s9, %s1267_s30  ;;  %s316_s26 = sshll.u32 %s307_s22, 4  ;;  %s1715_s26 = int_to_ptr.vmem [resolvable:$true] %s316_s26 }
  0x20   : > { %s1268_s27 = sshll.u32 %s313_s18, 6  ;;  %p1443_p3 = pneg %p1711_p0 }
  0x21   : > { %s1720_s21 = scalar_lea.hbm %s1994_s0, %s1268_s27  ;;  %s1446_s19 = scalar_lea.hbm %s1994_s0, 12288 }
  0x22   : > { %s1441_s15 = scalar_lea.hbm %s1720_s21, 1536  ;;  %p1447_p6 = scmp.lt.u32.totalorder %s1720_s21, %s1994_s0 }
  0x23   : > { %p1442_p2 = scmp.ne.s32.totalorder %s1720_s21, %s1441_s15  ;;  %p1448_p7 = scmp.lt.u32.totalorder %s1446_s19, %s1441_s15 }
  0x24   : > { %p1450_p11 = scmp.lt.u32.totalorder %s1441_s15, %s1720_s21 }
  0x25   : > { %p1444_p4 = pnand %p1443_p3, %p1442_p2  ;;  %p1449_p10 = por %p1448_p7, %p1447_p6 }
  0x27   : > { %p1445_p5 = pneg %p1444_p4  ;;  %p1451_p13 = por %p1450_p11, %p1449_p10 }
  0x29   : > { %p1452_p1 = pnand %p1451_p13, %p1445_p5 }
  0x2b   : > { %1455 = shalt.err (!%p1452_p1)
}
  0x2c   : > { %s1456_s29 = scalar_lea.vmem %s1715_s26, 1536  ;;  %s1571_s18 = smov [#allocation2]  }
  0x2d   : > { %p1457_p2 = scmp.ne.s32.totalorder %s1715_s26, %s1456_s29  ;;  %s1461_s22 = sshll.u32 %s1571_s18, 4  ;;  %s1462_s22 = int_to_ptr.vmem [resolvable:$false] %s1461_s22 }
  0x2e   : > { %s1463_s27 = scalar_lea.vmem %s1462_s22, 3072  ;;  %p1464_p9 = scmp.lt.s32.totalorder %s1715_s26, %s1462_s22 }
  0x2f   : > { %p1459_p4 = pnand %p1457_p2, %p1443_p3  ;;  %p1465_p6 = scmp.lt.s32.totalorder %s1463_s27, %s1456_s29 }
  0x31   : > { %p1460_p12 = pneg %p1459_p4  ;;  %p1466_p7 = por %p1465_p6, %p1464_p9 }
  0x33   : > { %p1467_p10 = pnand %p1466_p7, %p1460_p12 }
  0x35   : > { %1470 = shalt.err (!%p1467_p10)
}
  0x36   : > { %s1572_s15 = smov 512   ;;  %s1573_s9 = smov 128  }
  0x37   : > { %s1574_s30 = smov 8   ;;  %p324_p1 = scmp.lt.s32.totalorder %s1569_s16, 9 }
  0x38   : > { %1324 = dma.hbm_to_vmem [thread:$0]  (!%p1711_p0), %s1720_s21, 1536, %s1715_s26, %s1723_s23, %s1572_s15, %s1573_s9, %s1574_s30  }
  0x39   : > { %p2023_p3 = scmp.ge.s32.totalorder %s1569_s16, 1 }
  0x3b   : > { %p325_p5 = pnand %p2023_p3, %p324_p1 }
  0x3c   : > { %s1755_s19 = sand.u32 (!%p325_p5), 1, %s1545_s10  }
  0x3d   : > { %328 = sbr.rel (%p325_p5) target bundleno = 1142 (0x476), region = 56  ;;  %s331_s28 = scalar_lea.sflag (!%p325_p5), [#allocation3], %s1755_s19 }
  0x3e   : > { %s1316_s20 = smul.u32 (!%p325_p5), 96, %s1755_s19 }
  0x40   : > { %s1759_s29 = scalar_lea.vmem (!%p325_p5), [#allocation2], %s1316_s20 }
  0x44   : > { %1532 = dma.done.wait (%p1688_p8), %s331_s28, 1536  }
  0x45   : > { %1534 = vsyncadd (%p1688_p8), %s331_s28, 4294965760  ;;  %v1575_v0 = vmov 0   ;;  %v1401_v1 = vld [vmem:[%s1759_s29 + $0x4] ss:$8 sps:$4 sm:$0xff]   ;;  %v1403_v2 = vld [vmem:[%s1759_s29] ss:$8 sps:$4 sm:$0xff]  }
  0x46   : > { %653 = vmatprep.mubr.bf16.mxu0 %v1575_v0  ;;  %1399 = vset.pattern.permute.xlu0 %v1575_v0  ;;  %v1404_v3 = vld [vmem:[%s1759_s29 + $0x14] ss:$8 sps:$4 sm:$0xff]   ;;  %v1406_v4 = vld [vmem:[%s1759_s29 + $0x10] ss:$8 sps:$4 sm:$0xff]   ;;  %v1407_v5 = vld [vmem:[%s1759_s29 + $0x24] ss:$8 sps:$4 sm:$0xff]  }
  0x47   : > { %1400 = vset.pattern.permute.xlu1 %v1575_v0  ;;  %894 = vmatprep.mubr.bf16.mxu1 %v1575_v0  ;;  %v1409_v6 = vld [vmem:[%s1759_s29 + $0x20] ss:$8 sps:$4 sm:$0xff]   ;;  %v1410_v7 = vld [vmem:[%s1759_s29 + $0x34] ss:$8 sps:$4 sm:$0xff]   ;;  %v1412_v8 = vld [vmem:[%s1759_s29 + $0x30] ss:$8 sps:$4 sm:$0xff]  }
  0x48   : > { %621 = vmatprep.subr.bf16.mxu0 %v1401_v1  ;;  %v1413_v9 = vld [vmem:[%s1759_s29 + $0x44] ss:$8 sps:$4 sm:$0xff]   ;;  %v1415_v10 = vld [vmem:[%s1759_s29 + $0x40] ss:$8 sps:$4 sm:$0xff]   ;;  %v1416_v12 = vld [vmem:[%s1759_s29 + $0x54] ss:$8 sps:$4 sm:$0xff]  }
  0x49   : > { %622 = vmatpush1.bf16.msra.mxu0 %v1403_v2  ;;  %v400_v11 = vld [vmem:[%s1996_s2] sm:$0xff]  ;;  %v402_v13 = vld [vmem:[%s1996_s2 + $0x10] sm:$0xff]  ;;  %v401_v14 = vld [vmem:[%s1996_s2 + $0x8] sm:$0xff]  ;;  %vm596_vm0 = vcmask 785408   ;;  %vm997_vm1 = vcmask 523264   ;;  %vm1076_vm2 = vcmask 261120  }
  0x4a   : > { %623 = vmatprep.subr.bf16.mxu0 %v1404_v3  ;;  %418 = vperm.xlu0 %1399, %v400_v11   ;;  %v403_v15 = vld [vmem:[%s1996_s2 + $0x18] sm:$0xff]  ;;  %v404_v17 = vld [vmem:[%s1996_s2 + $0x20] sm:$0xff]  ;;  %v405_v19 = vld [vmem:[%s1996_s2 + $0x28] sm:$0xff]  ;;  %s2024_s23 = sld [smem:[#allocation9_spill]]  ;;  %s1270_s18 = sshll.u32 %s1755_s19, 4 }
  0x4b   : > { %428 = vperm.xlu1 %1400, %v402_v13   ;;  %v1418_v16 = vld [vmem:[%s1759_s29 + $0x50] ss:$8 sps:$4 sm:$0xff]   ;;  %v1419_v18 = vld [vmem:[%s1995_s1] sm:$0xff]   ;;  %v1420_v23 = vld [vmem:[%s1995_s1 + $0x8] sm:$0xff]   ;;  %s1309_s22 = sshll.u32 %s1553_s12, 1  ;;  %s368_s30 = scalar_lea.vmem [#allocation5], %s1270_s18 }
  0x4c   : > { %v406_v20 = vld [vmem:[%s1996_s2 + $0x30] sm:$0xff]  ;;  %v407_v21 = vld [vmem:[%s1996_s2 + $0x38] sm:$0xff]  ;;  %v408_v22 = vld [vmem:[%s1996_s2 + $0x40] sm:$0xff]  ;;  %s1176_s20 = sshll.u32 %s368_s30, 4  ;;  %s2025_s24 = sld [smem:[#allocation14_spill]]  ;;  %s1942_s20 = int_to_ptr.vmem [resolvable:$true] %s1176_s20 }
  0x4d   : > { %624 = vmatpush1.bf16.msra.mxu0 %v1406_v4  ;;  %v409_v24 = vld [vmem:[%s1996_s2 + $0x48] sm:$0xff]  ;;  %v410_v25 = vld [vmem:[%s1996_s2 + $0x50] sm:$0xff]  ;;  %v411_v26 = vld [vmem:[%s1996_s2 + $0x58] sm:$0xff]  ;;  %s1160_s12 = scalar_lea.sflag [#allocation4], %s1755_s19  ;;  %s1471_s26 = scalar_lea.vmem %s1942_s20, 256 }
  0x4e   : > { %625 = vmatprep.subr.bf16.mxu0 %v1407_v5  ;;  %423 = vperm.xlu0 %1399, %v401_v14   ;;  %v412_v27 = vld [vmem:[%s1996_s2 + $0x60] sm:$0xff]  ;;  %v1421_v28 = vld [vmem:[%s1995_s1 + $0x10] sm:$0xff]   ;;  %v413_v29 = vld [vmem:[%s1996_s2 + $0x68] sm:$0xff]  ;;  %p1472_p8 = scmp.ne.s32.totalorder %s1942_s20, %s1471_s26  ;;  %p2026_p9 = scmp.ne.s32.totalorder %s2019_s25, 0 }
  0x4f   : > { %433 = vperm.xlu1 %1400, %v403_v15   ;;  %v414_v30 = vld [vmem:[%s1996_s2 + $0x70] sm:$0xff]  ;;  %v415_v31 = vld [vmem:[%s1996_s2 + $0x78] sm:$0xff]  ;;  %v790_v32 = vld [vmem:[%s1998_s4] sm:$0xff]  ;;  %s1576_s21 = smov [#allocation5]  }
  0x50   : > { %v1422_v33 = vld [vmem:[%s1995_s1 + $0x18] sm:$0xff]   ;;  %v791_v34 = vld [vmem:[%s1998_s4 + $0x8] sm:$0xff]  ;;  %v792_v35 = vld [vmem:[%s1998_s4 + $0x10] sm:$0xff]  ;;  %s1310_s27 = sshll.u32 %s2024_s23, 3  ;;  %p1473_p12 = pnand %p1472_p8, %p2026_p9 }
  0x51   : > { %626 = vmatpush1.bf16.msra.mxu0 %v1409_v6  ;;  %v793_v36 = vld [vmem:[%s1998_s4 + $0x18] sm:$0xff]  ;;  %v794_v37 = vld [vmem:[%s1998_s4 + $0x20] sm:$0xff]  ;;  %v795_v39 = vld [vmem:[%s1998_s4 + $0x28] sm:$0xff]  ;;  %s1172_s15 = sadd.s32 %s1310_s27, %s1309_s22  ;;  %s1475_s23 = sshll.u32 %s1576_s21, 4  ;;  %s1476_s23 = int_to_ptr.vmem [resolvable:$false] %s1475_s23 }
  0x52   : > { %627 = vmatprep.subr.bf16.mxu0 %v1410_v7  ;;  %438 = vperm.xlu0 %1399, %v404_v17   ;;  %v1423_v38 = vld [vmem:[%s1995_s1 + $0x20] sm:$0xff]   ;;  %v796_v40 = vld [vmem:[%s1998_s4 + $0x30] sm:$0xff]  ;;  %v797_v41 = vld [vmem:[%s1998_s4 + $0x38] sm:$0xff]  ;;  %s1311_s9 = sshll.u32 %s1172_s15, 7  ;;  %p1474_p0 = pneg %p1473_p12 }
  0x53   : > { %443 = vperm.xlu1 %1400, %v405_v19   ;;  %v963_v42 = vld [vmem:[%s2000_s6] sm:$0xff]  ;;  %v1424_v43 = vld [vmem:[%s1995_s1 + $0x28] sm:$0xff]   ;;  %v965_v45 = vld [vmem:[%s2000_s6 + $0x10] sm:$0xff]  ;;  %s1940_s29 = scalar_lea.hbm %s2025_s24, %s1311_s9  ;;  %s1477_s18 = scalar_lea.vmem %s1476_s23, 512 }
  0x54   : > { %v964_v44 = vld [vmem:[%s2000_s6 + $0x8] sm:$0xff]  ;;  %v966_v46 = vld [vmem:[%s2000_s6 + $0x18] sm:$0xff]  ;;  %v1070_v47 = vld [vmem:[%s2002_s8] sm:$0xff]  ;;  %p1478_p11 = scmp.lt.s32.totalorder %s1942_s20, %s1476_s23  ;;  %p1479_p13 = scmp.lt.s32.totalorder %s1477_s18, %s1471_s26 }
  0x55   : > { %628 = vmatpush1.bf16.msra.mxu0 %v1412_v8  ;;  %v1425_v48 = vld [vmem:[%s1995_s1 + $0x30] sm:$0xff]   ;;  %v1426_v49 = vld [vmem:[%s1995_s1 + $0x38] sm:$0xff]  }
  0x56   : > { %629 = vmatprep.subr.bf16.mxu0 %v1413_v9  ;;  %448 = vperm.xlu0 %1399, %v406_v20   ;;  %p1480_p2 = por %p1479_p13, %p1478_p11 }
  0x57   : > { %453 = vperm.xlu1 %1400, %v407_v21  }
  0x58   : > { %p1481_p4 = pnand %p1480_p2, %p1474_p0 }
  0x59   : > { %630 = vmatpush1.bf16.msra.mxu0 %v1415_v10 }
  0x5a   : > { %631 = vmatprep.subr.bf16.mxu0 %v1416_v12  ;;  %458 = vperm.xlu0 %1399, %v408_v22  }
  0x5b   : > { %463 = vperm.xlu1 %1400, %v409_v24  }
  0x5d   : > { %632 = vmatpush1.bf16.msra.mxu0 %v1418_v16 }
  0x5e   : > { %468 = vperm.xlu0 %1399, %v410_v25  }
  0x5f   : > { %473 = vperm.xlu1 %1400, %v411_v26  }
  0x60   : > { %1291 = vmatmul.mubr.msk.bf16.vlgmr.msra.gmra.mrb[0].mxu0 %vm596_vm0, %v1419_v18 }
  0x61   : > { %663 = vmatprep.mubr.bf16.mxu0 %v1575_v0 }
  0x62   : > { %478 = vperm.xlu0 %1399, %v412_v27  }
  0x63   : > { %483 = vperm.xlu1 %1400, %v413_v29  }
  0x66   : > { %488 = vperm.xlu0 %1399, %v414_v30  }
  0x67   : > { %493 = vperm.xlu1 %1400, %v415_v31  }
  0x68   : > { %1292 = vmatmul.mubr.msk.bf16.gmra.mrb[4].mxu0 %vm596_vm0, %v1420_v23 }
  0x69   : > { %673 = vmatprep.mubr.bf16.mxu0 %v1575_v0 }
  0x6a   : > { %800 = vperm.xlu0 %1399, %v790_v32  }
  0x6b   : > { %805 = vperm.xlu1 %1400, %v791_v34  }
  0x6e   : > { %810 = vperm.xlu0 %1399, %v792_v35  }
  0x6f   : > { %815 = vperm.xlu1 %1400, %v793_v36  }
  0x70   : > { %1293 = vmatmul.mubr.msk.bf16.gmra.mrb[8].mxu0 %vm596_vm0, %v1421_v28 }
  0x71   : > { %683 = vmatprep.mubr.bf16.mxu0 %v1575_v0 }
  0x72   : > { %820 = vperm.xlu0 %1399, %v794_v37  }
  0x73   : > { %825 = vperm.xlu1 %1400, %v795_v39  }
  0x76   : > { %830 = vperm.xlu0 %1399, %v796_v40  }
  0x77   : > { %835 = vperm.xlu1 %1400, %v797_v41  }
  0x78   : > { %1294 = vmatmul.mubr.msk.bf16.gmra.mrb[12].mxu0 %vm596_vm0, %v1422_v33 }
  0x79   : > { %693 = vmatprep.mubr.bf16.mxu0 %v1575_v0 }
  0x7a   : > { %969 = vperm.xlu0 %1399, %v963_v42  }
  0x7b   : > { %974 = vperm.xlu1 %1400, %v964_v44  }
  0x7e   : > { %979 = vperm.xlu0 %1399, %v965_v45  }
  0x7f   : > { %984 = vperm.xlu1 %1400, %v966_v46  }
  0x80   : > { %1295 = vmatmul.mubr.msk.bf16.gmra.mrb[16].mxu0 %vm596_vm0, %v1423_v38 }
  0x81   : > { %703 = vmatprep.mubr.bf16.mxu0 %v1575_v0 }
  0x82   : > { %1073 = vperm.xlu0 %1399, %v1070_v47  }
  0x88   : > { %1296 = vmatmul.mubr.msk.bf16.gmra.mrb[20].mxu0 %vm596_vm0, %v1424_v43 }
  0x89   : > { %713 = vmatprep.mubr.bf16.mxu0 %v1575_v0 }
  0x90   : > { %1297 = vmatmul.mubr.msk.bf16.gmra.mrb[24].mxu0 %vm596_vm0, %v1425_v48 }
  0x91   : > { %723 = vmatprep.mubr.bf16.mxu0 %v1575_v0 }
  0x98   : > { %1298 = vmatmul.mubr.msk.bf16.gmra.mrb[28].mxu0 %vm596_vm0, %v1426_v49 }
  0xc9   : > { %v419_v50 = vpop.permute.xlu0 %418 }
  0xca   : > { %v429_v59 = vpop.permute.xlu1 %428 }
  0xcd   : > { %v424_v54 = vpop.permute.xlu0 %423 }
  0xce   : > { %v434_v7 = vpop.permute.xlu1 %433 }
  0xd1   : > { %v439_v18 = vpop.permute.xlu0 %438 }
  0xd2   : > { %v444_v23 = vpop.permute.xlu1 %443 }
  0xd5   : > { %v449_v34 = vpop.permute.xlu0 %448 }
  0xd6   : > { %v454_v39 = vpop.permute.xlu1 %453 }
 0x133   : > { %v655_v51 = vpop.f32.mrb[0].mxu0 }
 0x134   : > { %v656_v52 = vadd.f32 %v655_v51, %v419_v50  ;;  %v657_v53 = vpop.f32.mrb[1].mxu0 }
 0x135   : > { %v658_v55 = vadd.f32 %v657_v53, %v419_v50  ;;  %v659_v56 = vpop.f32.mrb[2].mxu0  ;;  %v459_v50 = vpop.permute.xlu0 %458 }
 0x136   : > { %v660_v57 = vadd.f32 %v659_v56, %v424_v54  ;;  %v661_v58 = vpop.f32.mrb[3].mxu0  ;;  %v734_v61 = vmax.f32 %v656_v52, 0.0 }
 0x137   : > { %v662_v60 = vadd.f32 %v661_v58, %v424_v54  ;;  %v735_v63 = vmax.f32 %v658_v55, 0.0  ;;  %v464_v55 = vpop.permute.xlu1 %463 }
 0x138   : > { %v736_v62 = vmax.f32 %v660_v57, 0.0 }
 0x139   : > { %v737_v1 = vmax.f32 %v662_v60, 0.0 }
 0x13a   : > { %v766_v2 = vpack.c.bf16 %v736_v62, %v734_v61 }
 0x13b   : > { %v665_v3 = vpop.f32.mrb[4].mxu0  ;;  %v767_v4 = vpack.c.bf16 %v737_v1, %v735_v63 }
 0x13c   : > { %v666_v5 = vadd.f32 %v665_v3, %v429_v59  ;;  %v667_v6 = vpop.f32.mrb[5].mxu0  ;;  %v469_v3 = vpop.permute.xlu0 %468 }
 0x13d   : > { %v668_v8 = vadd.f32 %v667_v6, %v429_v59  ;;  %v669_v9 = vpop.f32.mrb[6].mxu0  ;;  %862 = vmatprep.subr.bf16.mxu1 %v767_v4 }
 0x13e   : > { %v670_v10 = vadd.f32 %v669_v9, %v434_v7  ;;  %v671_v11 = vpop.f32.mrb[7].mxu0  ;;  %863 = vmatpush1.bf16.msra.mxu1 %v766_v2  ;;  %v738_v13 = vmax.f32 %v666_v5, 0.0 }
 0x13f   : > { %v672_v12 = vadd.f32 %v671_v11, %v434_v7  ;;  %v739_v15 = vmax.f32 %v668_v8, 0.0  ;;  %v474_v8 = vpop.permute.xlu1 %473 }
 0x140   : > { %v740_v14 = vmax.f32 %v670_v10, 0.0 }
 0x141   : > { %v741_v16 = vmax.f32 %v672_v12, 0.0 }
 0x142   : > { %v768_v17 = vpack.c.bf16 %v740_v14, %v738_v13 }
 0x143   : > { %v769_v19 = vpack.c.bf16 %v741_v16, %v739_v15  ;;  %v675_v20 = vpop.f32.mrb[8].mxu0 }
 0x144   : > { %v676_v21 = vadd.f32 %v675_v20, %v439_v18  ;;  %v677_v22 = vpop.f32.mrb[9].mxu0 }
 0x145   : > { %v678_v24 = vadd.f32 %v677_v22, %v439_v18  ;;  %v679_v25 = vpop.f32.mrb[10].mxu0  ;;  %864 = vmatprep.subr.bf16.mxu1 %v769_v19  ;;  %v479_v19 = vpop.permute.xlu0 %478 }
 0x146   : > { %v680_v26 = vadd.f32 %v679_v25, %v444_v23  ;;  %v681_v27 = vpop.f32.mrb[11].mxu0  ;;  %865 = vmatpush1.bf16.msra.mxu1 %v768_v17  ;;  %v742_v29 = vmax.f32 %v676_v21, 0.0 }
 0x147   : > { %v682_v28 = vadd.f32 %v681_v27, %v444_v23  ;;  %v743_v31 = vmax.f32 %v678_v24, 0.0  ;;  %v484_v24 = vpop.permute.xlu1 %483 }
 0x148   : > { %v744_v30 = vmax.f32 %v680_v26, 0.0 }
 0x149   : > { %v745_v32 = vmax.f32 %v682_v28, 0.0 }
 0x14a   : > { %v770_v33 = vpack.c.bf16 %v744_v30, %v742_v29 }
 0x14b   : > { %v771_v35 = vpack.c.bf16 %v745_v32, %v743_v31  ;;  %v685_v36 = vpop.f32.mrb[12].mxu0 }
 0x14c   : > { %v686_v37 = vadd.f32 %v685_v36, %v449_v34  ;;  %v687_v38 = vpop.f32.mrb[13].mxu0 }
 0x14d   : > { %v688_v40 = vadd.f32 %v687_v38, %v449_v34  ;;  %v689_v41 = vpop.f32.mrb[14].mxu0  ;;  %866 = vmatprep.subr.bf16.mxu1 %v771_v35  ;;  %v489_v35 = vpop.permute.xlu0 %488 }
 0x14e   : > { %v690_v42 = vadd.f32 %v689_v41, %v454_v39  ;;  %v691_v43 = vpop.f32.mrb[15].mxu0  ;;  %867 = vmatpush1.bf16.msra.mxu1 %v770_v33  ;;  %v746_v45 = vmax.f32 %v686_v37, 0.0 }
 0x14f   : > { %v692_v44 = vadd.f32 %v691_v43, %v454_v39  ;;  %v747_v47 = vmax.f32 %v688_v40, 0.0  ;;  %v494_v40 = vpop.permute.xlu1 %493 }
 0x150   : > { %v748_v46 = vmax.f32 %v690_v42, 0.0 }
 0x151   : > { %v749_v48 = vmax.f32 %v692_v44, 0.0 }
 0x152   : > { %v772_v49 = vpack.c.bf16 %v748_v46, %v746_v45 }
 0x153   : > { %v773_v51 = vpack.c.bf16 %v749_v48, %v747_v47  ;;  %v695_v52 = vpop.f32.mrb[16].mxu0 }
 0x154   : > { %v696_v53 = vadd.f32 %v695_v52, %v459_v50  ;;  %v697_v54 = vpop.f32.mrb[17].mxu0  ;;  %v1427_v52 = vld [vmem:[%s1997_s3] sm:$0xff]  }
 0x155   : > { %v698_v56 = vadd.f32 %v697_v54, %v459_v50  ;;  %v699_v57 = vpop.f32.mrb[18].mxu0  ;;  %868 = vmatprep.subr.bf16.mxu1 %v773_v51  ;;  %v1429_v54 = vld [vmem:[%s1997_s3 + $0x10] sm:$0xff]  }
 0x156   : > { %v700_v58 = vadd.f32 %v699_v57, %v464_v55  ;;  %v701_v59 = vpop.f32.mrb[19].mxu0  ;;  %869 = vmatpush1.bf16.msra.mxu1 %v772_v49  ;;  %v750_v61 = vmax.f32 %v696_v53, 0.0  ;;  %v1428_v53 = vld [vmem:[%s1997_s3 + $0x8] sm:$0xff]  }
 0x157   : > { %v702_v60 = vadd.f32 %v701_v59, %v464_v55  ;;  %v751_v63 = vmax.f32 %v698_v56, 0.0  ;;  %v1430_v55 = vld [vmem:[%s1997_s3 + $0x18] sm:$0xff]   ;;  %v801_v56 = vpop.permute.xlu0 %800 }
 0x158   : > { %v752_v62 = vmax.f32 %v700_v58, 0.0 }
 0x159   : > { %v753_v1 = vmax.f32 %v702_v60, 0.0  ;;  %v806_v60 = vpop.permute.xlu1 %805 }
 0x15a   : > { %v774_v2 = vpack.c.bf16 %v752_v62, %v750_v61 }
 0x15b   : > { %v775_v4 = vpack.c.bf16 %v753_v1, %v751_v63  ;;  %v705_v5 = vpop.f32.mrb[20].mxu0 }
 0x15c   : > { %v706_v6 = vadd.f32 %v705_v5, %v469_v3  ;;  %v707_v7 = vpop.f32.mrb[21].mxu0 }
 0x15d   : > { %v708_v9 = vadd.f32 %v707_v7, %v469_v3  ;;  %v709_v10 = vpop.f32.mrb[22].mxu0  ;;  %870 = vmatprep.subr.bf16.mxu1 %v775_v4 }
 0x15e   : > { %v710_v11 = vadd.f32 %v709_v10, %v474_v8  ;;  %v711_v12 = vpop.f32.mrb[23].mxu0  ;;  %871 = vmatpush1.bf16.msra.mxu1 %v774_v2  ;;  %v754_v14 = vmax.f32 %v706_v6, 0.0 }
 0x15f   : > { %v712_v13 = vadd.f32 %v711_v12, %v474_v8  ;;  %v755_v16 = vmax.f32 %v708_v9, 0.0  ;;  %v811_v8 = vpop.permute.xlu0 %810 }
 0x160   : > { %v756_v15 = vmax.f32 %v710_v11, 0.0 }
 0x161   : > { %v757_v17 = vmax.f32 %v712_v13, 0.0  ;;  %v816_v13 = vpop.permute.xlu1 %815 }
 0x162   : > { %v776_v18 = vpack.c.bf16 %v756_v15, %v754_v14 }
 0x163   : > { %v777_v20 = vpack.c.bf16 %v757_v17, %v755_v16  ;;  %v715_v21 = vpop.f32.mrb[24].mxu0 }
 0x164   : > { %v716_v22 = vadd.f32 %v715_v21, %v479_v19  ;;  %v717_v23 = vpop.f32.mrb[25].mxu0 }
 0x165   : > { %v718_v25 = vadd.f32 %v717_v23, %v479_v19  ;;  %v719_v26 = vpop.f32.mrb[26].mxu0  ;;  %872 = vmatprep.subr.bf16.mxu1 %v777_v20 }
 0x166   : > { %v720_v27 = vadd.f32 %v719_v26, %v484_v24  ;;  %v721_v28 = vpop.f32.mrb[27].mxu0  ;;  %873 = vmatpush1.bf16.msra.mxu1 %v776_v18  ;;  %v758_v30 = vmax.f32 %v716_v22, 0.0 }
 0x167   : > { %v722_v29 = vadd.f32 %v721_v28, %v484_v24  ;;  %v759_v32 = vmax.f32 %v718_v25, 0.0  ;;  %v821_v24 = vpop.permute.xlu0 %820 }
 0x168   : > { %v760_v31 = vmax.f32 %v720_v27, 0.0 }
 0x169   : > { %v761_v33 = vmax.f32 %v722_v29, 0.0  ;;  %v826_v29 = vpop.permute.xlu1 %825 }
 0x16a   : > { %v778_v34 = vpack.c.bf16 %v760_v31, %v758_v30 }
 0x16b   : > { %v779_v36 = vpack.c.bf16 %v761_v33, %v759_v32  ;;  %v725_v37 = vpop.f32.mrb[28].mxu0 }
 0x16c   : > { %v726_v38 = vadd.f32 %v725_v37, %v489_v35  ;;  %v727_v39 = vpop.f32.mrb[29].mxu0 }
 0x16d   : > { %v728_v41 = vadd.f32 %v727_v39, %v489_v35  ;;  %v729_v42 = vpop.f32.mrb[30].mxu0  ;;  %874 = vmatprep.subr.bf16.mxu1 %v779_v36 }
 0x16e   : > { %v730_v43 = vadd.f32 %v729_v42, %v494_v40  ;;  %v731_v44 = vpop.f32.mrb[31].mxu0  ;;  %875 = vmatpush1.bf16.msra.mxu1 %v778_v34  ;;  %v762_v46 = vmax.f32 %v726_v38, 0.0 }
 0x16f   : > { %v732_v45 = vadd.f32 %v731_v44, %v494_v40  ;;  %v763_v48 = vmax.f32 %v728_v41, 0.0  ;;  %v831_v40 = vpop.permute.xlu0 %830 }
 0x170   : > { %v764_v47 = vmax.f32 %v730_v43, 0.0 }
 0x171   : > { %v765_v49 = vmax.f32 %v732_v45, 0.0  ;;  %v836_v45 = vpop.permute.xlu1 %835 }
 0x172   : > { %v780_v50 = vpack.c.bf16 %v764_v47, %v762_v46 }
 0x173   : > { %v781_v51 = vpack.c.bf16 %v765_v49, %v763_v48 }
 0x175   : > { %876 = vmatprep.subr.bf16.mxu1 %v781_v51 }
 0x176   : > { %877 = vmatpush1.bf16.msra.mxu1 %v780_v50 }
 0x179   : > { %895 = vmatmul.mubr.bf16.vlgmr.msra.gmra.mrb[0].mxu1 %v1427_v52 }
 0x17a   : > { %904 = vmatprep.mubr.bf16.mxu1 %v1575_v0 }
 0x181   : > { %905 = vmatmul.mubr.bf16.gmra.mrb[4].mxu1 %v1428_v53 }
 0x182   : > { %914 = vmatprep.mubr.bf16.mxu1 %v1575_v0 }
 0x189   : > { %915 = vmatmul.mubr.bf16.gmra.mrb[8].mxu1 %v1429_v54 }
 0x18a   : > { %924 = vmatprep.mubr.bf16.mxu1 %v1575_v0 }
 0x191   : > { %925 = vmatmul.mubr.bf16.gmra.mrb[12].mxu1 %v1430_v55 }
 0x192   : > { %1036 = vmatprep.mubr.bf16.mxu1 %v1575_v0 }
 0x24c   : > { %v896_v57 = vpop.f32.mrb[0].mxu1 }
 0x24d   : > { %v897_v58 = vadd.f32 %v896_v57, %v801_v56  ;;  %v898_v59 = vpop.f32.mrb[1].mxu1  ;;  %v1431_v57 = vld [vmem:[%s1999_s5] sm:$0xff]  }
 0x24e   : > { %v899_v61 = vadd.f32 %v898_v59, %v801_v56  ;;  %v900_v62 = vpop.f32.mrb[2].mxu1  ;;  %v970_v59 = vpop.permute.xlu0 %969 }
 0x24f   : > { %v901_v63 = vadd.f32 %v900_v62, %v806_v60  ;;  %v902_v1 = vpop.f32.mrb[3].mxu1  ;;  %v935_v3 = vmax.f32 %v897_v58, 0.0  ;;  %v1432_v58 = vld [vmem:[%s1999_s5 + $0x8] sm:$0xff]  }
 0x250   : > { %v903_v2 = vadd.f32 %v902_v1, %v806_v60  ;;  %v936_v5 = vmax.f32 %v899_v61, 0.0 }
 0x251   : > { %v937_v4 = vmax.f32 %v901_v63, 0.0  ;;  %v975_v63 = vpop.permute.xlu1 %974 }
 0x252   : > { %v938_v6 = vmax.f32 %v903_v2, 0.0 }
 0x253   : > { %v951_v7 = vpack.c.bf16 %v937_v4, %v935_v3 }
 0x254   : > { %v952_v9 = vpack.c.bf16 %v938_v6, %v936_v5  ;;  %v906_v10 = vpop.f32.mrb[4].mxu1 }
 0x255   : > { %v907_v11 = vadd.f32 %v906_v10, %v811_v8  ;;  %v908_v12 = vpop.f32.mrb[5].mxu1 }
 0x256   : > { %v909_v14 = vadd.f32 %v908_v12, %v811_v8  ;;  %v910_v15 = vpop.f32.mrb[6].mxu1  ;;  %1004 = vmatprep.subr.bf16.mxu1 %v952_v9 }
 0x257   : > { %v911_v16 = vadd.f32 %v910_v15, %v816_v13  ;;  %v912_v17 = vpop.f32.mrb[7].mxu1  ;;  %1005 = vmatpush1.bf16.msra.mxu1 %v951_v7  ;;  %v939_v19 = vmax.f32 %v907_v11, 0.0  ;;  %v980_v11 = vpop.permute.xlu0 %979 }
 0x258   : > { %v913_v18 = vadd.f32 %v912_v17, %v816_v13  ;;  %v940_v21 = vmax.f32 %v909_v14, 0.0  ;;  %v985_v15 = vpop.permute.xlu1 %984 }
 0x259   : > { %v941_v20 = vmax.f32 %v911_v16, 0.0 }
 0x25a   : > { %v942_v22 = vmax.f32 %v913_v18, 0.0 }
 0x25b   : > { %v953_v23 = vpack.c.bf16 %v941_v20, %v939_v19 }
 0x25c   : > { %v954_v25 = vpack.c.bf16 %v942_v22, %v940_v21  ;;  %v916_v26 = vpop.f32.mrb[8].mxu1 }
 0x25d   : > { %v917_v27 = vadd.f32 %v916_v26, %v821_v24  ;;  %v918_v28 = vpop.f32.mrb[9].mxu1 }
 0x25e   : > { %v919_v30 = vadd.f32 %v918_v28, %v821_v24  ;;  %v920_v31 = vpop.f32.mrb[10].mxu1  ;;  %1006 = vmatprep.subr.bf16.mxu1 %v954_v25  ;;  %v1074_v28 = vpop.permute.xlu0 %1073 }
 0x25f   : > { %v921_v32 = vadd.f32 %v920_v31, %v826_v29  ;;  %v922_v33 = vpop.f32.mrb[11].mxu1  ;;  %1007 = vmatpush1.bf16.msra.mxu1 %v953_v23  ;;  %v943_v35 = vmax.f32 %v917_v27, 0.0  ;;  %v1069_v27 = vld [vmem:[%s2001_s7] sm:$0xf] }
 0x260   : > { %v923_v34 = vadd.f32 %v922_v33, %v826_v29  ;;  %v944_v37 = vmax.f32 %v919_v30, 0.0 }
 0x261   : > { %v945_v36 = vmax.f32 %v921_v32, 0.0 }
 0x262   : > { %v946_v38 = vmax.f32 %v923_v34, 0.0 }
 0x263   : > { %v955_v39 = vpack.c.bf16 %v945_v36, %v943_v35 }
 0x264   : > { %v956_v41 = vpack.c.bf16 %v946_v38, %v944_v37  ;;  %v926_v42 = vpop.f32.mrb[12].mxu1 }
 0x265   : > { %v927_v43 = vadd.f32 %v926_v42, %v831_v40  ;;  %v928_v44 = vpop.f32.mrb[13].mxu1 }
 0x266   : > { %v929_v46 = vadd.f32 %v928_v44, %v831_v40  ;;  %v930_v47 = vpop.f32.mrb[14].mxu1  ;;  %1008 = vmatprep.subr.bf16.mxu1 %v956_v41 }
 0x267   : > { %v931_v48 = vadd.f32 %v930_v47, %v836_v45  ;;  %v932_v49 = vpop.f32.mrb[15].mxu1  ;;  %1009 = vmatpush1.bf16.msra.mxu1 %v955_v39  ;;  %v947_v51 = vmax.f32 %v927_v43, 0.0 }
 0x268   : > { %v933_v50 = vadd.f32 %v932_v49, %v836_v45  ;;  %v948_v53 = vmax.f32 %v929_v46, 0.0 }
 0x269   : > { %v949_v52 = vmax.f32 %v931_v48, 0.0 }
 0x26a   : > { %v950_v54 = vmax.f32 %v933_v50, 0.0 }
 0x26b   : > { %v957_v55 = vpack.c.bf16 %v949_v52, %v947_v51 }
 0x26c   : > { %v958_v56 = vpack.c.bf16 %v950_v54, %v948_v53 }
 0x26e   : > { %1010 = vmatprep.subr.bf16.mxu1 %v958_v56 }
 0x26f   : > { %1011 = vmatpush1.bf16.msra.mxu1 %v957_v55 }
 0x272   : > { %1305 = vmatmul.mubr.msk.bf16.vlgmr.msra.gmra.mrb[16].mxu1 %vm997_vm1, %v1431_v57 }
 0x273   : > { %1046 = vmatprep.mubr.bf16.mxu1 %v1575_v0 }
 0x27a   : > { %1306 = vmatmul.mubr.msk.bf16.gmra.mrb[20].mxu1 %vm997_vm1, %v1432_v58 }
 0x27b   : > { %1112 = vmatprep.mubr.bf16.mxu1 %v1575_v0 }
 0x345   : > { %v1038_v60 = vpop.f32.mrb[16].mxu1 }
 0x346   : > { %v1039_v61 = vadd.f32 %v1038_v60, %v970_v59  ;;  %v1040_v62 = vpop.f32.mrb[17].mxu1 }
 0x347   : > { %v1041_v1 = vadd.f32 %v1040_v62, %v970_v59  ;;  %v1042_v2 = vpop.f32.mrb[18].mxu1 }
 0x348   : > { %v1043_v3 = vadd.f32 %v1042_v2, %v975_v63  ;;  %v1044_v4 = vpop.f32.mrb[19].mxu1  ;;  %v1057_v6 = vmax.f32 %v1039_v61, 0.0 }
 0x349   : > { %v1045_v5 = vadd.f32 %v1044_v4, %v975_v63  ;;  %v1058_v8 = vmax.f32 %v1041_v1, 0.0 }
 0x34a   : > { %v1059_v7 = vmax.f32 %v1043_v3, 0.0 }
 0x34b   : > { %v1060_v9 = vmax.f32 %v1045_v5, 0.0 }
 0x34c   : > { %v1065_v10 = vpack.c.bf16 %v1059_v7, %v1057_v6 }
 0x34d   : > { %v1066_v12 = vpack.c.bf16 %v1060_v9, %v1058_v8  ;;  %v1048_v13 = vpop.f32.mrb[20].mxu1 }
 0x34e   : > { %v1049_v14 = vadd.f32 %v1048_v13, %v980_v11  ;;  %v1050_v0 = vpop.f32.mrb[21].mxu1 }
 0x34f   : > { %v1051_v16 = vadd.f32 %v1050_v0, %v980_v11  ;;  %v1052_v17 = vpop.f32.mrb[22].mxu1  ;;  %1080 = vmatprep.subr.bf16.mxu1 %v1066_v12 }
 0x350   : > { %v1053_v18 = vadd.f32 %v1052_v17, %v985_v15  ;;  %v1054_v19 = vpop.f32.mrb[23].mxu1  ;;  %1081 = vmatpush1.bf16.msra.mxu1 %v1065_v10  ;;  %v1061_v21 = vmax.f32 %v1049_v14, 0.0 }
 0x351   : > { %v1055_v20 = vadd.f32 %v1054_v19, %v985_v15  ;;  %v1062_v23 = vmax.f32 %v1051_v16, 0.0 }
 0x352   : > { %v1063_v22 = vmax.f32 %v1053_v18, 0.0 }
 0x353   : > { %v1064_v24 = vmax.f32 %v1055_v20, 0.0 }
 0x354   : > { %v1067_v25 = vpack.c.bf16 %v1063_v22, %v1061_v21 }
 0x355   : > { %v1068_v26 = vpack.c.bf16 %v1064_v24, %v1062_v23 }
 0x357   : > { %1082 = vmatprep.subr.bf16.mxu1 %v1068_v26 }
 0x358   : > { %1083 = vmatpush1.bf16.msra.mxu1 %v1067_v25 }
 0x35b   : > { %1307 = vmatmul.mubr.msk.bf16.vlgmr.msra.gmra.mrb[24].mxu1 %vm1076_vm2, %v1069_v27 }
 0x42e   : > { %v1114_v29 = vpop.f32.mrb[24].mxu1 }
 0x42f   : > { %v1115_v30 = vadd.f32 %v1114_v29, %v1074_v28  ;;  %v1116_v31 = vpop.f32.mrb[25].mxu1 }
 0x430   : > { %v1117_v32 = vadd.f32 %v1116_v31, %v1074_v28  ;;  %v1118_v33 = vpop.f32.mrb[26].mxu1 }
 0x431   : > { %v1121_v34 = vrot.slane %v1115_v30, 4  ;;  %v1119_v35 = vpop.f32.mrb[27].mxu1 }
 0x432   : > { %v1127_v36 = vrot.slane %v1117_v32, 4 }
 0x433   : > { %v1122_v37 = vmax.f32 %v1115_v30, %v1121_v34 }
 0x434   : > { %v1128_v38 = vmax.f32 %v1117_v32, %v1127_v36 }
 0x435   : > { %v1123_v39 = vrot.slane %v1122_v37, 2 }
 0x436   : > { %v1129_v40 = vrot.slane %v1128_v38, 2 }
 0x437   : > { %v1124_v41 = vmax.f32 %v1122_v37, %v1123_v39 }
 0x438   : > { %v1130_v42 = vmax.f32 %v1128_v38, %v1129_v40 }
 0x439   : > { %v1125_v43 = vrot.slane %v1124_v41, 1 }
 0x43a   : > { %v1131_v44 = vrot.slane %v1130_v42, 1 }
 0x43b   : > { %v1126_v45 = vmax.f32 %v1124_v41, %v1125_v43 }
 0x43c   : > { %v1132_v46 = vmax.f32 %v1130_v42, %v1131_v44 }
 0x43d   : > { %v1133_v47 = vsub.f32 %v1115_v30, %v1126_v45 }
 0x43e   : > { %v1134_v48 = vsub.f32 %v1117_v32, %v1132_v46 }
 0x43f   : > { %v1135_v49 = vmul.f32 1.442695, %v1133_v47 }
 0x440   : > { %v1137_v50 = vmul.f32 1.442695, %v1134_v48 }
 0x441   : > { %1433 = vpow2.f32 %v1135_v49 }
 0x442   : > { %1435 = vpow2.f32 %v1137_v50 }
 0x44b   : > { %v1434_v51 = vpop.eup %1433 }
 0x44c   : > { %v1436_v52 = vpop.eup %1435  ;;  %v1139_v53 = vrot.slane %v1434_v51, 4 }
 0x44d   : > { %v1145_v54 = vrot.slane %v1436_v52, 4 }
 0x44e   : > { %v1140_v55 = vadd.f32 %v1434_v51, %v1139_v53 }
 0x44f   : > { %v1146_v56 = vadd.f32 %v1436_v52, %v1145_v54 }
 0x450   : > { %v1141_v57 = vrot.slane %v1140_v55, 2 }
 0x451   : > { %v1147_v58 = vrot.slane %v1146_v56, 2 }
 0x452   : > { %v1142_v59 = vadd.f32 %v1141_v57, %v1140_v55 }
 0x453   : > { %v1148_v60 = vadd.f32 %v1147_v58, %v1146_v56 }
 0x454   : > { %v1143_v61 = vrot.slane %v1142_v59, 1 }
 0x455   : > { %v1149_v62 = vrot.slane %v1148_v60, 1 }
 0x456   : > { %v1144_v63 = vadd.f32 %v1143_v61, %v1142_v59 }
 0x457   : > { %v1150_v1 = vadd.f32 %v1149_v62, %v1148_v60 }
 0x458   : > { %1437 = vlog2.f32 %v1144_v63 }
 0x459   : > { %1439 = vlog2.f32 %v1150_v1 }
 0x462   : > { %v1438_v2 = vpop.eup %1437 }
 0x463   : > { %v1440_v3 = vpop.eup %1439  ;;  %v1152_v4 = vmul.f32 0.6931472, %v1438_v2 }
 0x464   : > { %v1154_v5 = vmul.f32 0.6931472, %v1440_v3 }
 0x465   : > { %v1155_v6 = vsub.f32 %v1133_v47, %v1152_v4 }
 0x466   : > { %v1156_v7 = vsub.f32 %v1134_v48, %v1154_v5 }
 0x467   : > { %1157 = vst [vmem:[%s368_s30] sm:$0xff] %v1155_v6 }
 0x468   : > { %1158 = vst [vmem:[%s368_s30 + $0x8] sm:$0xff] %v1156_v7 }
 0x469   : > { %1484 = shalt.err (!%p1481_p4)
}
 0x46a   : > { %s1485_s19 = scalar_lea.hbm %s1940_s29, 256  ;;  %s1489_s15 = scalar_lea.hbm %s2025_s24, 2048 }
 0x46b   : > { %p1486_p6 = scmp.ne.s32.totalorder %s1940_s29, %s1485_s19  ;;  %p1490_p1 = scmp.lt.u32.totalorder %s1940_s29, %s2025_s24 }
 0x46c   : > { %p1491_p3 = scmp.lt.u32.totalorder %s1489_s15, %s1485_s19  ;;  %p1493_p8 = scmp.lt.u32.totalorder %s1485_s19, %s1940_s29 }
 0x46d   : > { %p1487_p7 = pnand %p1486_p6, %p2026_p9 }
 0x46e   : > { %p1492_p5 = por %p1491_p3, %p1490_p1 }
 0x46f   : > { %p1488_p10 = pneg %p1487_p7 }
 0x470   : > { %p1494_p12 = por %p1493_p8, %p1492_p5 }
 0x472   : > { %p1495_p0 = pnand %p1494_p12, %p1488_p10 }
 0x474   : > { %1498 = shalt.err (!%p1495_p0)
}
 0x475   : > { %1319 = dma.vmem_to_hbm [thread:$0]  (%p2026_p9), %s1942_s20, 256, %s1940_s29, %s1160_s12  }
 0x476 PF: > { %s2027_s28 = sld [smem:[#allocation8_spill]]  ;;  %s2028_s13 = sld [smem:[#allocation13_spill]] }
 0x477   : > { %p1330_p11 = scmp.ge.s32.totalorder %s1569_s16, 2 }
 0x47c   : > { %s1188_s26 = sand.u32 1, %s2027_s28   ;;  %p2029_p13 = scmp.ne.s32.totalorder %s2028_s13, 0 }
 0x47d   : > { %s1189_s21 = scalar_lea.sflag [#allocation4], %s1188_s26 }
 0x47e   : > { %p1326_p2 = pnand %p1330_p11, %p2029_p13 }
 0x480   : > { %1536 = dma.done.wait (!%p1326_p2), %s1189_s21, 256  }
 0x481   : > { %1538 = vsyncadd (!%p1326_p2), %s1189_s21, 4294967040  ;;  %s25_s16 = sadd.s32 1, %s1569_s16   ;;  %s2030_s13 = sld [smem:[#allocation10_spill]] }
 0x482   : > { %p22_p4 = scmp.ge.s32.totalorder %s25_s16, 10   ;;  %s2031_s25 = sld [smem:[#allocation11_spill]] }
 0x483   : > { %s2032_s15 = sld [smem:[#allocation12_spill]]  ;;  %s2033_s30 = smov %s1545_s10 }
 0x484   : > { %s2034_s10 = smov %s1549_s11  ;;  %s2035_s11 = smov %s1705_s17 }
 0x485   : > { %s2036_s12 = smov %s1561_s14  ;;  %24 = sbr.rel (!%p22_p4) target bundleno = 9 (0x9), region = 101 }
 0x488   : > { %s2037_s14 = smov %s2031_s25 }
 0x48c   :  { %1194 = vsyncpa [#allocation3], 1 }
 0x48d   :  { %1196 = vsyncpa [#allocation3 + $0x1], 1 }
 0x48e   :  { %1197 = vsyncpa [#allocation4], 1 }
 0x48f   :  { %1199 = vsyncpa [#allocation4 + $0x1], 1 }

// kernel: tpu_custom_call.1
= control target key start
LH: loop header
LB: loop body
LE: loop exit
PB: predicated region body
PF: predicated region fallthrough
CT: control target
= control target key end

     0   :  { %s1994_s0 = inlined_call_operand.hbm [shape: bf16[2,96,1024], index: 0, kind: input, shape index: {}]   ;;  %s1995_s1 = inlined_call_operand.vmem [shape: bf16[128,96], index: 1, kind: input, shape index: {}]   ;;  %s1996_s2 = inlined_call_operand.vmem [shape: f32[128,1], index: 2, kind: input, shape index: {}]   ;;  %s1997_s3 = inlined_call_operand.vmem [shape: bf16[64,128], index: 3, kind: input, shape index: {}]   ;;  %s1998_s4 = inlined_call_operand.vmem [shape: f32[64,1], index: 4, kind: input, shape index: {}]   ;;  %s1999_s5 = inlined_call_operand.vmem [shape: bf16[32,64], index: 5, kind: input, shape index: {}]   ;;  %s2000_s6 = inlined_call_operand.vmem [shape: f32[32,1], index: 6, kind: input, shape index: {}]   ;;  %s2001_s7 = inlined_call_operand.vmem [shape: bf16[8,32], index: 7, kind: input, shape index: {}]   ;;  %s2002_s8 = inlined_call_operand.vmem [shape: f32[8,1], index: 8, kind: input, shape index: {}]   ;;  %s2003_s9 = inlined_call_operand.hbm [shape: f32[2,8,1024], index: 9, kind: output, shape index: {}]  }
   0x1   :  { %2011 = sst [smem:[#allocation14_spill]] %s2003_s9 }
   0x2   :  { %14 = vsyncpa [#allocation3], 0 }
   0x3   :  { %16 = vsyncpa [#allocation3 + $0x1], 0 }
   0x4   :  { %17 = vsyncpa [#allocation4], 0 }
   0x5   :  { %19 = vsyncpa [#allocation4 + $0x1], 0  ;;  %s1627_s30 = smov 0   ;;  %s1629_s10 = smov 0  }
   0x6   :  { %s1631_s11 = smov 0   ;;  %s1633_s12 = smov 0  }
   0x7   :  { %s1635_s13 = smov 0   ;;  %s1637_s14 = smov 0  }
   0x8   :  { %s1639_s15 = smov 0   ;;  %s1641_s16 = smov 0  }
   0x9 LB: > { %2012 = sst [smem:[#allocation8_spill]] %s1541_s30  ;;  %s1263_s17 = sadd.s32 4294967295, %s1569_s16   ;;  %s1569_s16 = sphi %s1641_s16, %s25_s16   ;;  %s1565_s15 = sphi %s1639_s15, %s2032_s15   ;;  %s1561_s14 = sphi %s1637_s14, %s2037_s14   ;;  %s1557_s13 = sphi %s1635_s13, %s2030_s13   ;;  %s1553_s12 = sphi %s1633_s12, %s2036_s12   ;;  %s1549_s11 = sphi %s1631_s11, %s2035_s11   ;;  %s1545_s10 = sphi %s1629_s10, %s2034_s10   ;;  %s1541_s30 = sphi %s1627_s30, %s2033_s30  }
   0xa   : > { %2013 = sst [smem:[#allocation9_spill]] %s1557_s13  ;;  %s1264_s18 = sadd.s32 4294967294, %s1569_s16  }
   0xb   : > { %2014 = sst [smem:[#allocation10_spill]] %s1565_s15  ;;  %s34_s19 = sadd.s32 1, %s1561_s14 }
   0xc   : > { %s37_s20 = sadd.s32 1, %s1565_s15  ;;  %p35_p0 = scmp.ge.s32.totalorder %s34_s19, 4 }
   0xd   : > { %s46_s21 = sadd.s32 1, %s1549_s11  ;;  %p53_p1 = scmp.ne.s32.totalorder %s1549_s11, %s1545_s10 }
   0xe   : > { %p54_p2 = scmp.eq.s32.totalorder %s1569_s16, 0  ;;  %s2039_s19 = smov (%p35_p0, %s34_s19), 0 }
   0xf   : > { %2015 = sst [smem:[#allocation11_spill]] %s2039_s19  ;;  %s2041_s20 = smov (!%p35_p0, %s37_s20), %s1565_s15 }
  0x10   : > { %s42_s22 = ssub.s32 %s1561_s14, %s2039_s19  ;;  %p1680_p3 = por %p54_p2, %p53_p1 }
  0x11   : > { %p39_p4 = scmp.ge.s32.totalorder %s2041_s20, 2  ;;  %p59_p5 = scmp.ne.s32.totalorder %s1545_s10, %s1541_s30 }
  0x12   : > { %p60_p6 = scmp.eq.s32.totalorder %s1263_s17, 0  ;;  %p253_p7 = scmp.eq.s32.totalorder %s1263_s17, 7 }
  0x13   : > { %s2043_s20 = smov (%p39_p4, %s2041_s20), 0  ;;  %p259_p10 = scmp.eq.s32.totalorder %s1264_s18, 7 }
  0x14   : > { %2017 = sst [smem:[#allocation12_spill]] %s2043_s20  ;;  %p1688_p8 = por %p60_p6, %p59_p5 }
  0x15   : > { %p1692_p9 = por %p253_p7, %p53_p1  ;;  %s41_s26 = ssub.s32 %s1565_s15, %s2043_s20 }
  0x16   : > { %s43_s27 = sor.u32 %s42_s22, %s41_s26  ;;  %p1698_p12 = por %p259_p10, %p59_p5 }
  0x17   : > { %s2019_s25 = scalar_select %p1692_p9, 1, 0 }
  0x18   : > { %p44_p11 = scmp.eq.s32.totalorder %s43_s27, 0  ;;  %p1329_p13 = scmp.lt.s32.totalorder %s1569_s16, 8 }
  0x19   : > { %s2020_s28 = scalar_select %p1698_p12, 1, 0 }
  0x1a   : > { %s303_s29 = sand.u32 1, %s1549_s11   ;;  %s1267_s30 = sshll.u32 %s1561_s14, 1 }
  0x1b   : > { %2021 = sst [smem:[#allocation13_spill]] %s2020_s28  ;;  %s1314_s19 = smul.u32 96, %s303_s29 }
  0x1c   : > { %s1705_s17 = scalar_select %p44_p11, %s1549_s11, %s46_s21  }
  0x1d   : > { %s1315_s9 = smul.u32 96, %s1565_s15  ;;  %p1711_p0 = pnand %p1329_p13, %p1680_p3 }
  0x1e   : > { %s307_s22 = scalar_lea.vmem [#allocation2], %s1314_s19  ;;  %s1723_s23 = scalar_lea.sflag [#allocation3], %s303_s29 }
  0x1f   : > { %s313_s18 = sadd.s32 %s1315_s9, %s1267_s30  ;;  %s316_s26 = sshll.u32 %s307_s22, 4  ;;  %s1715_s26 = int_to_ptr.vmem [resolvable:$true] %s316_s26 }
  0x20   : > { %s1268_s27 = sshll.u32 %s313_s18, 6  ;;  %p1443_p3 = pneg %p1711_p0 }
  0x21   : > { %s1720_s21 = scalar_lea.hbm %s1994_s0, %s1268_s27  ;;  %s1446_s19 = scalar_lea.hbm %s1994_s0, 12288 }
  0x22   : > { %s1441_s15 = scalar_lea.hbm %s1720_s21, 1536  ;;  %p1447_p6 = scmp.lt.u32.totalorder %s1720_s21, %s1994_s0 }
  0x23   : > { %p1442_p2 = scmp.ne.s32.totalorder %s1720_s21, %s1441_s15  ;;  %p1448_p7 = scmp.lt.u32.totalorder %s1446_s19, %s1441_s15 }
  0x24   : > { %p1450_p11 = scmp.lt.u32.totalorder %s1441_s15, %s1720_s21 }
  0x25   : > { %p1444_p4 = pnand %p1443_p3, %p1442_p2  ;;  %p1449_p10 = por %p1448_p7, %p1447_p6 }
  0x27   : > { %p1445_p5 = pneg %p1444_p4  ;;  %p1451_p13 = por %p1450_p11, %p1449_p10 }
  0x29   : > { %p1452_p1 = pnand %p1451_p13, %p1445_p5 }
  0x2b   : > { %1455 = shalt.err (!%p1452_p1)
}
  0x2c   : > { %s1456_s29 = scalar_lea.vmem %s1715_s26, 1536  ;;  %s1571_s18 = smov [#allocation2]  }
  0x2d   : > { %p1457_p2 = scmp.ne.s32.totalorder %s1715_s26, %s1456_s29  ;;  %s1461_s22 = sshll.u32 %s1571_s18, 4  ;;  %s1462_s22 = int_to_ptr.vmem [resolvable:$false] %s1461_s22 }
  0x2e   : > { %s1463_s27 = scalar_lea.vmem %s1462_s22, 3072  ;;  %p1464_p9 = scmp.lt.s32.totalorder %s1715_s26, %s1462_s22 }
  0x2f   : > { %p1459_p4 = pnand %p1457_p2, %p1443_p3  ;;  %p1465_p6 = scmp.lt.s32.totalorder %s1463_s27, %s1456_s29 }
  0x31   : > { %p1460_p12 = pneg %p1459_p4  ;;  %p1466_p7 = por %p1465_p6, %p1464_p9 }
  0x33   : > { %p1467_p10 = pnand %p1466_p7, %p1460_p12 }
  0x35   : > { %1470 = shalt.err (!%p1467_p10)
}
  0x36   : > { %s1572_s15 = smov 512   ;;  %s1573_s9 = smov 128  }
  0x37   : > { %s1574_s30 = smov 8   ;;  %p324_p1 = scmp.lt.s32.totalorder %s1569_s16, 9 }
  0x38   : > { %1324 = dma.hbm_to_vmem [thread:$0]  (!%p1711_p0), %s1720_s21, 1536, %s1715_s26, %s1723_s23, %s1572_s15, %s1573_s9, %s1574_s30  }
  0x39   : > { %p2023_p3 = scmp.ge.s32.totalorder %s1569_s16, 1 }
  0x3b   : > { %p325_p5 = pnand %p2023_p3, %p324_p1 }
  0x3c   : > { %s1755_s19 = sand.u32 (!%p325_p5), 1, %s1545_s10  }
  0x3d   : > { %328 = sbr.rel (%p325_p5) target bundleno = 1142 (0x476), region = 56  ;;  %s331_s28 = scalar_lea.sflag (!%p325_p5), [#allocation3], %s1755_s19 }
  0x3e   : > { %s1316_s20 = smul.u32 (!%p325_p5), 96, %s1755_s19 }
  0x40   : > { %s1759_s29 = scalar_lea.vmem (!%p325_p5), [#allocation2], %s1316_s20 }
  0x44   : > { %1532 = dma.done.wait (%p1688_p8), %s331_s28, 1536  }
  0x45   : > { %1534 = vsyncadd (%p1688_p8), %s331_s28, 4294965760  ;;  %v1575_v0 = vmov 0   ;;  %v1401_v1 = vld [vmem:[%s1759_s29 + $0x4] ss:$8 sps:$4 sm:$0xff]   ;;  %v1403_v2 = vld [vmem:[%s1759_s29] ss:$8 sps:$4 sm:$0xff]  }
  0x46   : > { %653 = vmatprep.mubr.bf16.mxu0 %v1575_v0  ;;  %1399 = vset.pattern.permute.xlu0 %v1575_v0  ;;  %v1404_v3 = vld [vmem:[%s1759_s29 + $0x14] ss:$8 sps:$4 sm:$0xff]   ;;  %v1406_v4 = vld [vmem:[%s1759_s29 + $0x10] ss:$8 sps:$4 sm:$0xff]   ;;  %v1407_v5 = vld [vmem:[%s1759_s29 + $0x24] ss:$8 sps:$4 sm:$0xff]  }
  0x47   : > { %1400 = vset.pattern.permute.xlu1 %v1575_v0  ;;  %894 = vmatprep.mubr.bf16.mxu1 %v1575_v0  ;;  %v1409_v6 = vld [vmem:[%s1759_s29 + $0x20] ss:$8 sps:$4 sm:$0xff]   ;;  %v1410_v7 = vld [vmem:[%s1759_s29 + $0x34] ss:$8 sps:$4 sm:$0xff]   ;;  %v1412_v8 = vld [vmem:[%s1759_s29 + $0x30] ss:$8 sps:$4 sm:$0xff]  }
  0x48   : > { %621 = vmatprep.subr.bf16.mxu0 %v1401_v1  ;;  %v1413_v9 = vld [vmem:[%s1759_s29 + $0x44] ss:$8 sps:$4 sm:$0xff]   ;;  %v1415_v10 = vld [vmem:[%s1759_s29 + $0x40] ss:$8 sps:$4 sm:$0xff]   ;;  %v1416_v12 = vld [vmem:[%s1759_s29 + $0x54] ss:$8 sps:$4 sm:$0xff]  }
  0x49   : > { %622 = vmatpush1.bf16.msra.mxu0 %v1403_v2  ;;  %v400_v11 = vld [vmem:[%s1996_s2] sm:$0xff]  ;;  %v402_v13 = vld [vmem:[%s1996_s2 + $0x10] sm:$0xff]  ;;  %v401_v14 = vld [vmem:[%s1996_s2 + $0x8] sm:$0xff]  ;;  %vm596_vm0 = vcmask 785408   ;;  %vm997_vm1 = vcmask 523264   ;;  %vm1076_vm2 = vcmask 261120  }
  0x4a   : > { %623 = vmatprep.subr.bf16.mxu0 %v1404_v3  ;;  %418 = vperm.xlu0 %1399, %v400_v11   ;;  %v403_v15 = vld [vmem:[%s1996_s2 + $0x18] sm:$0xff]  ;;  %v404_v17 = vld [vmem:[%s1996_s2 + $0x20] sm:$0xff]  ;;  %v405_v19 = vld [vmem:[%s1996_s2 + $0x28] sm:$0xff]  ;;  %s2024_s23 = sld [smem:[#allocation9_spill]]  ;;  %s1270_s18 = sshll.u32 %s1755_s19, 4 }
  0x4b   : > { %428 = vperm.xlu1 %1400, %v402_v13   ;;  %v1418_v16 = vld [vmem:[%s1759_s29 + $0x50] ss:$8 sps:$4 sm:$0xff]   ;;  %v1419_v18 = vld [vmem:[%s1995_s1] sm:$0xff]   ;;  %v1420_v23 = vld [vmem:[%s1995_s1 + $0x8] sm:$0xff]   ;;  %s1309_s22 = sshll.u32 %s1553_s12, 1  ;;  %s368_s30 = scalar_lea.vmem [#allocation5], %s1270_s18 }
  0x4c   : > { %v406_v20 = vld [vmem:[%s1996_s2 + $0x30] sm:$0xff]  ;;  %v407_v21 = vld [vmem:[%s1996_s2 + $0x38] sm:$0xff]  ;;  %v408_v22 = vld [vmem:[%s1996_s2 + $0x40] sm:$0xff]  ;;  %s1176_s20 = sshll.u32 %s368_s30, 4  ;;  %s2025_s24 = sld [smem:[#allocation14_spill]]  ;;  %s1942_s20 = int_to_ptr.vmem [resolvable:$true] %s1176_s20 }
  0x4d   : > { %624 = vmatpush1.bf16.msra.mxu0 %v1406_v4  ;;  %v409_v24 = vld [vmem:[%s1996_s2 + $0x48] sm:$0xff]  ;;  %v410_v25 = vld [vmem:[%s1996_s2 + $0x50] sm:$0xff]  ;;  %v411_v26 = vld [vmem:[%s1996_s2 + $0x58] sm:$0xff]  ;;  %s1160_s12 = scalar_lea.sflag [#allocation4], %s1755_s19  ;;  %s1471_s26 = scalar_lea.vmem %s1942_s20, 256 }
  0x4e   : > { %625 = vmatprep.subr.bf16.mxu0 %v1407_v5  ;;  %423 = vperm.xlu0 %1399, %v401_v14   ;;  %v412_v27 = vld [vmem:[%s1996_s2 + $0x60] sm:$0xff]  ;;  %v1421_v28 = vld [vmem:[%s1995_s1 + $0x10] sm:$0xff]   ;;  %v413_v29 = vld [vmem:[%s1996_s2 + $0x68] sm:$0xff]  ;;  %p1472_p8 = scmp.ne.s32.totalorder %s1942_s20, %s1471_s26  ;;  %p2026_p9 = scmp.ne.s32.totalorder %s2019_s25, 0 }
  0x4f   : > { %433 = vperm.xlu1 %1400, %v403_v15   ;;  %v414_v30 = vld [vmem:[%s1996_s2 + $0x70] sm:$0xff]  ;;  %v415_v31 = vld [vmem:[%s1996_s2 + $0x78] sm:$0xff]  ;;  %v790_v32 = vld [vmem:[%s1998_s4] sm:$0xff]  ;;  %s1576_s21 = smov [#allocation5]  }
  0x50   : > { %v1422_v33 = vld [vmem:[%s1995_s1 + $0x18] sm:$0xff]   ;;  %v791_v34 = vld [vmem:[%s1998_s4 + $0x8] sm:$0xff]  ;;  %v792_v35 = vld [vmem:[%s1998_s4 + $0x10] sm:$0xff]  ;;  %s1310_s27 = sshll.u32 %s2024_s23, 3  ;;  %p1473_p12 = pnand %p1472_p8, %p2026_p9 }
  0x51   : > { %626 = vmatpush1.bf16.msra.mxu0 %v1409_v6  ;;  %v793_v36 = vld [vmem:[%s1998_s4 + $0x18] sm:$0xff]  ;;  %v794_v37 = vld [vmem:[%s1998_s4 + $0x20] sm:$0xff]  ;;  %v795_v39 = vld [vmem:[%s1998_s4 + $0x28] sm:$0xff]  ;;  %s1172_s15 = sadd.s32 %s1310_s27, %s1309_s22  ;;  %s1475_s23 = sshll.u32 %s1576_s21, 4  ;;  %s1476_s23 = int_to_ptr.vmem [resolvable:$false] %s1475_s23 }
  0x52   : > { %627 = vmatprep.subr.bf16.mxu0 %v1410_v7  ;;  %438 = vperm.xlu0 %1399, %v404_v17   ;;  %v1423_v38 = vld [vmem:[%s1995_s1 + $0x20] sm:$0xff]   ;;  %v796_v40 = vld [vmem:[%s1998_s4 + $0x30] sm:$0xff]  ;;  %v797_v41 = vld [vmem:[%s1998_s4 + $0x38] sm:$0xff]  ;;  %s1311_s9 = sshll.u32 %s1172_s15, 7  ;;  %p1474_p0 = pneg %p1473_p12 }
  0x53   : > { %443 = vperm.xlu1 %1400, %v405_v19   ;;  %v963_v42 = vld [vmem:[%s2000_s6] sm:$0xff]  ;;  %v1424_v43 = vld [vmem:[%s1995_s1 + $0x28] sm:$0xff]   ;;  %v965_v45 = vld [vmem:[%s2000_s6 + $0x10] sm:$0xff]  ;;  %s1940_s29 = scalar_lea.hbm %s2025_s24, %s1311_s9  ;;  %s1477_s18 = scalar_lea.vmem %s1476_s23, 512 }
  0x54   : > { %v964_v44 = vld [vmem:[%s2000_s6 + $0x8] sm:$0xff]  ;;  %v966_v46 = vld [vmem:[%s2000_s6 + $0x18] sm:$0xff]  ;;  %v1070_v47 = vld [vmem:[%s2002_s8] sm:$0xff]  ;;  %p1478_p11 = scmp.lt.s32.totalorder %s1942_s20, %s1476_s23  ;;  %p1479_p13 = scmp.lt.s32.totalorder %s1477_s18, %s1471_s26 }
  0x55   : > { %628 = vmatpush1.bf16.msra.mxu0 %v1412_v8  ;;  %v1425_v48 = vld [vmem:[%s1995_s1 + $0x30] sm:$0xff]   ;;  %v1426_v49 = vld [vmem:[%s1995_s1 + $0x38] sm:$0xff]  }
  0x56   : > { %629 = vmatprep.subr.bf16.mxu0 %v1413_v9  ;;  %448 = vperm.xlu0 %1399, %v406_v20   ;;  %p1480_p2 = por %p1479_p13, %p1478_p11 }
  0x57   : > { %453 = vperm.xlu1 %1400, %v407_v21  }
  0x58   : > { %p1481_p4 = pnand %p1480_p2, %p1474_p0 }
  0x59   : > { %630 = vmatpush1.bf16.msra.mxu0 %v1415_v10 }
  0x5a   : > { %631 = vmatprep.subr.bf16.mxu0 %v1416_v12  ;;  %458 = vperm.xlu0 %1399, %v408_v22  }
  0x5b   : > { %463 = vperm.xlu1 %1400, %v409_v24  }
  0x5d   : > { %632 = vmatpush1.bf16.msra.mxu0 %v1418_v16 }
  0x5e   : > { %468 = vperm.xlu0 %1399, %v410_v25  }
  0x5f   : > { %473 = vperm.xlu1 %1400, %v411_v26  }
  0x60   : > { %1291 = vmatmul.mubr.msk.bf16.vlgmr.msra.gmra.mrb[0].mxu0 %vm596_vm0, %v1419_v18 }
  0x61   : > { %663 = vmatprep.mubr.bf16.mxu0 %v1575_v0 }
  0x62   : > { %478 = vperm.xlu0 %1399, %v412_v27  }
  0x63   : > { %483 = vperm.xlu1 %1400, %v413_v29  }
  0x66   : > { %488 = vperm.xlu0 %1399, %v414_v30  }
  0x67   : > { %493 = vperm.xlu1 %1400, %v415_v31  }
  0x68   : > { %1292 = vmatmul.mubr.msk.bf16.gmra.mrb[4].mxu0 %vm596_vm0, %v1420_v23 }
  0x69   : > { %673 = vmatprep.mubr.bf16.mxu0 %v1575_v0 }
  0x6a   : > { %800 = vperm.xlu0 %1399, %v790_v32  }
  0x6b   : > { %805 = vperm.xlu1 %1400, %v791_v34  }
  0x6e   : > { %810 = vperm.xlu0 %1399, %v792_v35  }
  0x6f   : > { %815 = vperm.xlu1 %1400, %v793_v36  }
  0x70   : > { %1293 = vmatmul.mubr.msk.bf16.gmra.mrb[8].mxu0 %vm596_vm0, %v1421_v28 }
  0x71   : > { %683 = vmatprep.mubr.bf16.mxu0 %v1575_v0 }
  0x72   : > { %820 = vperm.xlu0 %1399, %v794_v37  }
  0x73   : > { %825 = vperm.xlu1 %1400, %v795_v39  }
  0x76   : > { %830 = vperm.xlu0 %1399, %v796_v40  }
  0x77   : > { %835 = vperm.xlu1 %1400, %v797_v41  }
  0x78   : > { %1294 = vmatmul.mubr.msk.bf16.gmra.mrb[12].mxu0 %vm596_vm0, %v1422_v33 }
  0x79   : > { %693 = vmatprep.mubr.bf16.mxu0 %v1575_v0 }
  0x7a   : > { %969 = vperm.xlu0 %1399, %v963_v42  }
  0x7b   : > { %974 = vperm.xlu1 %1400, %v964_v44  }
  0x7e   : > { %979 = vperm.xlu0 %1399, %v965_v45  }
  0x7f   : > { %984 = vperm.xlu1 %1400, %v966_v46  }
  0x80   : > { %1295 = vmatmul.mubr.msk.bf16.gmra.mrb[16].mxu0 %vm596_vm0, %v1423_v38 }
  0x81   : > { %703 = vmatprep.mubr.bf16.mxu0 %v1575_v0 }
  0x82   : > { %1073 = vperm.xlu0 %1399, %v1070_v47  }
  0x88   : > { %1296 = vmatmul.mubr.msk.bf16.gmra.mrb[20].mxu0 %vm596_vm0, %v1424_v43 }
  0x89   : > { %713 = vmatprep.mubr.bf16.mxu0 %v1575_v0 }
  0x90   : > { %1297 = vmatmul.mubr.msk.bf16.gmra.mrb[24].mxu0 %vm596_vm0, %v1425_v48 }
  0x91   : > { %723 = vmatprep.mubr.bf16.mxu0 %v1575_v0 }
  0x98   : > { %1298 = vmatmul.mubr.msk.bf16.gmra.mrb[28].mxu0 %vm596_vm0, %v1426_v49 }
  0xc9   : > { %v419_v50 = vpop.permute.xlu0 %418 }
  0xca   : > { %v429_v59 = vpop.permute.xlu1 %428 }
  0xcd   : > { %v424_v54 = vpop.permute.xlu0 %423 }
  0xce   : > { %v434_v7 = vpop.permute.xlu1 %433 }
  0xd1   : > { %v439_v18 = vpop.permute.xlu0 %438 }
  0xd2   : > { %v444_v23 = vpop.permute.xlu1 %443 }
  0xd5   : > { %v449_v34 = vpop.permute.xlu0 %448 }
  0xd6   : > { %v454_v39 = vpop.permute.xlu1 %453 }
 0x133   : > { %v655_v51 = vpop.f32.mrb[0].mxu0 }
 0x134   : > { %v656_v52 = vadd.f32 %v655_v51, %v419_v50  ;;  %v657_v53 = vpop.f32.mrb[1].mxu0 }
 0x135   : > { %v658_v55 = vadd.f32 %v657_v53, %v419_v50  ;;  %v659_v56 = vpop.f32.mrb[2].mxu0  ;;  %v459_v50 = vpop.permute.xlu0 %458 }
 0x136   : > { %v660_v57 = vadd.f32 %v659_v56, %v424_v54  ;;  %v661_v58 = vpop.f32.mrb[3].mxu0  ;;  %v734_v61 = vmax.f32 %v656_v52, 0.0 }
 0x137   : > { %v662_v60 = vadd.f32 %v661_v58, %v424_v54  ;;  %v735_v63 = vmax.f32 %v658_v55, 0.0  ;;  %v464_v55 = vpop.permute.xlu1 %463 }
 0x138   : > { %v736_v62 = vmax.f32 %v660_v57, 0.0 }
 0x139   : > { %v737_v1 = vmax.f32 %v662_v60, 0.0 }
 0x13a   : > { %v766_v2 = vpack.c.bf16 %v736_v62, %v734_v61 }
 0x13b   : > { %v665_v3 = vpop.f32.mrb[4].mxu0  ;;  %v767_v4 = vpack.c.bf16 %v737_v1, %v735_v63 }
 0x13c   : > { %v666_v5 = vadd.f32 %v665_v3, %v429_v59  ;;  %v667_v6 = vpop.f32.mrb[5].mxu0  ;;  %v469_v3 = vpop.permute.xlu0 %468 }
 0x13d   : > { %v668_v8 = vadd.f32 %v667_v6, %v429_v59  ;;  %v669_v9 = vpop.f32.mrb[6].mxu0  ;;  %862 = vmatprep.subr.bf16.mxu1 %v767_v4 }
 0x13e   : > { %v670_v10 = vadd.f32 %v669_v9, %v434_v7  ;;  %v671_v11 = vpop.f32.mrb[7].mxu0  ;;  %863 = vmatpush1.bf16.msra.mxu1 %v766_v2  ;;  %v738_v13 = vmax.f32 %v666_v5, 0.0 }
 0x13f   : > { %v672_v12 = vadd.f32 %v671_v11, %v434_v7  ;;  %v739_v15 = vmax.f32 %v668_v8, 0.0  ;;  %v474_v8 = vpop.permute.xlu1 %473 }
 0x140   : > { %v740_v14 = vmax.f32 %v670_v10, 0.0 }
 0x141   : > { %v741_v16 = vmax.f32 %v672_v12, 0.0 }
 0x142   : > { %v768_v17 = vpack.c.bf16 %v740_v14, %v738_v13 }
 0x143   : > { %v769_v19 = vpack.c.bf16 %v741_v16, %v739_v15  ;;  %v675_v20 = vpop.f32.mrb[8].mxu0 }
 0x144   : > { %v676_v21 = vadd.f32 %v675_v20, %v439_v18  ;;  %v677_v22 = vpop.f32.mrb[9].mxu0 }
 0x145   : > { %v678_v24 = vadd.f32 %v677_v22, %v439_v18  ;;  %v679_v25 = vpop.f32.mrb[10].mxu0  ;;  %864 = vmatprep.subr.bf16.mxu1 %v769_v19  ;;  %v479_v19 = vpop.permute.xlu0 %478 }
 0x146   : > { %v680_v26 = vadd.f32 %v679_v25, %v444_v23  ;;  %v681_v27 = vpop.f32.mrb[11].mxu0  ;;  %865 = vmatpush1.bf16.msra.mxu1 %v768_v17  ;;  %v742_v29 = vmax.f32 %v676_v21, 0.0 }
 0x147   : > { %v682_v28 = vadd.f32 %v681_v27, %v444_v23  ;;  %v743_v31 = vmax.f32 %v678_v24, 0.0  ;;  %v484_v24 = vpop.permute.xlu1 %483 }
 0x148   : > { %v744_v30 = vmax.f32 %v680_v26, 0.0 }
 0x149   : > { %v745_v32 = vmax.f32 %v682_v28, 0.0 }
 0x14a   : > { %v770_v33 = vpack.c.bf16 %v744_v30, %v742_v29 }
 0x14b   : > { %v771_v35 = vpack.c.bf16 %v745_v32, %v743_v31  ;;  %v685_v36 = vpop.f32.mrb[12].mxu0 }
 0x14c   : > { %v686_v37 = vadd.f32 %v685_v36, %v449_v34  ;;  %v687_v38 = vpop.f32.mrb[13].mxu0 }
 0x14d   : > { %v688_v40 = vadd.f32 %v687_v38, %v449_v34  ;;  %v689_v41 = vpop.f32.mrb[14].mxu0  ;;  %866 = vmatprep.subr.bf16.mxu1 %v771_v35  ;;  %v489_v35 = vpop.permute.xlu0 %488 }
 0x14e   : > { %v690_v42 = vadd.f32 %v689_v41, %v454_v39  ;;  %v691_v43 = vpop.f32.mrb[15].mxu0  ;;  %867 = vmatpush1.bf16.msra.mxu1 %v770_v33  ;;  %v746_v45 = vmax.f32 %v686_v37, 0.0 }
 0x14f   : > { %v692_v44 = vadd.f32 %v691_v43, %v454_v39  ;;  %v747_v47 = vmax.f32 %v688_v40, 0.0  ;;  %v494_v40 = vpop.permute.xlu1 %493 }
 0x150   : > { %v748_v46 = vmax.f32 %v690_v42, 0.0 }
 0x151   : > { %v749_v48 = vmax.f32 %v692_v44, 0.0 }
 0x152   : > { %v772_v49 = vpack.c.bf16 %v748_v46, %v746_v45 }
 0x153   : > { %v773_v51 = vpack.c.bf16 %v749_v48, %v747_v47  ;;  %v695_v52 = vpop.f32.mrb[16].mxu0 }
 0x154   : > { %v696_v53 = vadd.f32 %v695_v52, %v459_v50  ;;  %v697_v54 = vpop.f32.mrb[17].mxu0  ;;  %v1427_v52 = vld [vmem:[%s1997_s3] sm:$0xff]  }
 0x155   : > { %v698_v56 = vadd.f32 %v697_v54, %v459_v50  ;;  %v699_v57 = vpop.f32.mrb[18].mxu0  ;;  %868 = vmatprep.subr.bf16.mxu1 %v773_v51  ;;  %v1429_v54 = vld [vmem:[%s1997_s3 + $0x10] sm:$0xff]  }
 0x156   : > { %v700_v58 = vadd.f32 %v699_v57, %v464_v55  ;;  %v701_v59 = vpop.f32.mrb[19].mxu0  ;;  %869 = vmatpush1.bf16.msra.mxu1 %v772_v49  ;;  %v750_v61 = vmax.f32 %v696_v53, 0.0  ;;  %v1428_v53 = vld [vmem:[%s1997_s3 + $0x8] sm:$0xff]  }
 0x157   : > { %v702_v60 = vadd.f32 %v701_v59, %v464_v55  ;;  %v751_v63 = vmax.f32 %v698_v56, 0.0  ;;  %v1430_v55 = vld [vmem:[%s1997_s3 + $0x18] sm:$0xff]   ;;  %v801_v56 = vpop.permute.xlu0 %800 }
 0x158   : > { %v752_v62 = vmax.f32 %v700_v58, 0.0 }
 0x159   : > { %v753_v1 = vmax.f32 %v702_v60, 0.0  ;;  %v806_v60 = vpop.permute.xlu1 %805 }
 0x15a   : > { %v774_v2 = vpack.c.bf16 %v752_v62, %v750_v61 }
 0x15b   : > { %v775_v4 = vpack.c.bf16 %v753_v1, %v751_v63  ;;  %v705_v5 = vpop.f32.mrb[20].mxu0 }
 0x15c   : > { %v706_v6 = vadd.f32 %v705_v5, %v469_v3  ;;  %v707_v7 = vpop.f32.mrb[21].mxu0 }
 0x15d   : > { %v708_v9 = vadd.f32 %v707_v7, %v469_v3  ;;  %v709_v10 = vpop.f32.mrb[22].mxu0  ;;  %870 = vmatprep.subr.bf16.mxu1 %v775_v4 }
 0x15e   : > { %v710_v11 = vadd.f32 %v709_v10, %v474_v8  ;;  %v711_v12 = vpop.f32.mrb[23].mxu0  ;;  %871 = vmatpush1.bf16.msra.mxu1 %v774_v2  ;;  %v754_v14 = vmax.f32 %v706_v6, 0.0 }
 0x15f   : > { %v712_v13 = vadd.f32 %v711_v12, %v474_v8  ;;  %v755_v16 = vmax.f32 %v708_v9, 0.0  ;;  %v811_v8 = vpop.permute.xlu0 %810 }
 0x160   : > { %v756_v15 = vmax.f32 %v710_v11, 0.0 }
 0x161   : > { %v757_v17 = vmax.f32 %v712_v13, 0.0  ;;  %v816_v13 = vpop.permute.xlu1 %815 }
 0x162   : > { %v776_v18 = vpack.c.bf16 %v756_v15, %v754_v14 }
 0x163   : > { %v777_v20 = vpack.c.bf16 %v757_v17, %v755_v16  ;;  %v715_v21 = vpop.f32.mrb[24].mxu0 }
 0x164   : > { %v716_v22 = vadd.f32 %v715_v21, %v479_v19  ;;  %v717_v23 = vpop.f32.mrb[25].mxu0 }
 0x165   : > { %v718_v25 = vadd.f32 %v717_v23, %v479_v19  ;;  %v719_v26 = vpop.f32.mrb[26].mxu0  ;;  %872 = vmatprep.subr.bf16.mxu1 %v777_v20 }
 0x166   : > { %v720_v27 = vadd.f32 %v719_v26, %v484_v24  ;;  %v721_v28 = vpop.f32.mrb[27].mxu0  ;;  %873 = vmatpush1.bf16.msra.mxu1 %v776_v18  ;;  %v758_v30 = vmax.f32 %v716_v22, 0.0 }
 0x167   : > { %v722_v29 = vadd.f32 %v721_v28, %v484_v24  ;;  %v759_v32 = vmax.f32 %v718_v25, 0.0  ;;  %v821_v24 = vpop.permute.xlu0 %820 }
 0x168   : > { %v760_v31 = vmax.f32 %v720_v27, 0.0 }
 0x169   : > { %v761_v33 = vmax.f32 %v722_v29, 0.0  ;;  %v826_v29 = vpop.permute.xlu1 %825 }
 0x16a   : > { %v778_v34 = vpack.c.bf16 %v760_v31, %v758_v30 }
 0x16b   : > { %v779_v36 = vpack.c.bf16 %v761_v33, %v759_v32  ;;  %v725_v37 = vpop.f32.mrb[28].mxu0 }
 0x16c   : > { %v726_v38 = vadd.f32 %v725_v37, %v489_v35  ;;  %v727_v39 = vpop.f32.mrb[29].mxu0 }
 0x16d   : > { %v728_v41 = vadd.f32 %v727_v39, %v489_v35  ;;  %v729_v42 = vpop.f32.mrb[30].mxu0  ;;  %874 = vmatprep.subr.bf16.mxu1 %v779_v36 }
 0x16e   : > { %v730_v43 = vadd.f32 %v729_v42, %v494_v40  ;;  %v731_v44 = vpop.f32.mrb[31].mxu0  ;;  %875 = vmatpush1.bf16.msra.mxu1 %v778_v34  ;;  %v762_v46 = vmax.f32 %v726_v38, 0.0 }
 0x16f   : > { %v732_v45 = vadd.f32 %v731_v44, %v494_v40  ;;  %v763_v48 = vmax.f32 %v728_v41, 0.0  ;;  %v831_v40 = vpop.permute.xlu0 %830 }
 0x170   : > { %v764_v47 = vmax.f32 %v730_v43, 0.0 }
 0x171   : > { %v765_v49 = vmax.f32 %v732_v45, 0.0  ;;  %v836_v45 = vpop.permute.xlu1 %835 }
 0x172   : > { %v780_v50 = vpack.c.bf16 %v764_v47, %v762_v46 }
 0x173   : > { %v781_v51 = vpack.c.bf16 %v765_v49, %v763_v48 }
 0x175   : > { %876 = vmatprep.subr.bf16.mxu1 %v781_v51 }
 0x176   : > { %877 = vmatpush1.bf16.msra.mxu1 %v780_v50 }
 0x179   : > { %895 = vmatmul.mubr.bf16.vlgmr.msra.gmra.mrb[0].mxu1 %v1427_v52 }
 0x17a   : > { %904 = vmatprep.mubr.bf16.mxu1 %v1575_v0 }
 0x181   : > { %905 = vmatmul.mubr.bf16.gmra.mrb[4].mxu1 %v1428_v53 }
 0x182   : > { %914 = vmatprep.mubr.bf16.mxu1 %v1575_v0 }
 0x189   : > { %915 = vmatmul.mubr.bf16.gmra.mrb[8].mxu1 %v1429_v54 }
 0x18a   : > { %924 = vmatprep.mubr.bf16.mxu1 %v1575_v0 }
 0x191   : > { %925 = vmatmul.mubr.bf16.gmra.mrb[12].mxu1 %v1430_v55 }
 0x192   : > { %1036 = vmatprep.mubr.bf16.mxu1 %v1575_v0 }
 0x24c   : > { %v896_v57 = vpop.f32.mrb[0].mxu1 }
 0x24d   : > { %v897_v58 = vadd.f32 %v896_v57, %v801_v56  ;;  %v898_v59 = vpop.f32.mrb[1].mxu1  ;;  %v1431_v57 = vld [vmem:[%s1999_s5] sm:$0xff]  }
 0x24e   : > { %v899_v61 = vadd.f32 %v898_v59, %v801_v56  ;;  %v900_v62 = vpop.f32.mrb[2].mxu1  ;;  %v970_v59 = vpop.permute.xlu0 %969 }
 0x24f   : > { %v901_v63 = vadd.f32 %v900_v62, %v806_v60  ;;  %v902_v1 = vpop.f32.mrb[3].mxu1  ;;  %v935_v3 = vmax.f32 %v897_v58, 0.0  ;;  %v1432_v58 = vld [vmem:[%s1999_s5 + $0x8] sm:$0xff]  }
 0x250   : > { %v903_v2 = vadd.f32 %v902_v1, %v806_v60  ;;  %v936_v5 = vmax.f32 %v899_v61, 0.0 }
 0x251   : > { %v937_v4 = vmax.f32 %v901_v63, 0.0  ;;  %v975_v63 = vpop.permute.xlu1 %974 }
 0x252   : > { %v938_v6 = vmax.f32 %v903_v2, 0.0 }
 0x253   : > { %v951_v7 = vpack.c.bf16 %v937_v4, %v935_v3 }
 0x254   : > { %v952_v9 = vpack.c.bf16 %v938_v6, %v936_v5  ;;  %v906_v10 = vpop.f32.mrb[4].mxu1 }
 0x255   : > { %v907_v11 = vadd.f32 %v906_v10, %v811_v8  ;;  %v908_v12 = vpop.f32.mrb[5].mxu1 }
 0x256   : > { %v909_v14 = vadd.f32 %v908_v12, %v811_v8  ;;  %v910_v15 = vpop.f32.mrb[6].mxu1  ;;  %1004 = vmatprep.subr.bf16.mxu1 %v952_v9 }
 0x257   : > { %v911_v16 = vadd.f32 %v910_v15, %v816_v13  ;;  %v912_v17 = vpop.f32.mrb[7].mxu1  ;;  %1005 = vmatpush1.bf16.msra.mxu1 %v951_v7  ;;  %v939_v19 = vmax.f32 %v907_v11, 0.0  ;;  %v980_v11 = vpop.permute.xlu0 %979 }
 0x258   : > { %v913_v18 = vadd.f32 %v912_v17, %v816_v13  ;;  %v940_v21 = vmax.f32 %v909_v14, 0.0  ;;  %v985_v15 = vpop.permute.xlu1 %984 }
 0x259   : > { %v941_v20 = vmax.f32 %v911_v16, 0.0 }
 0x25a   : > { %v942_v22 = vmax.f32 %v913_v18, 0.0 }
 0x25b   : > { %v953_v23 = vpack.c.bf16 %v941_v20, %v939_v19 }
 0x25c   : > { %v954_v25 = vpack.c.bf16 %v942_v22, %v940_v21  ;;  %v916_v26 = vpop.f32.mrb[8].mxu1 }
 0x25d   : > { %v917_v27 = vadd.f32 %v916_v26, %v821_v24  ;;  %v918_v28 = vpop.f32.mrb[9].mxu1 }
 0x25e   : > { %v919_v30 = vadd.f32 %v918_v28, %v821_v24  ;;  %v920_v31 = vpop.f32.mrb[10].mxu1  ;;  %1006 = vmatprep.subr.bf16.mxu1 %v954_v25  ;;  %v1074_v28 = vpop.permute.xlu0 %1073 }
 0x25f   : > { %v921_v32 = vadd.f32 %v920_v31, %v826_v29  ;;  %v922_v33 = vpop.f32.mrb[11].mxu1  ;;  %1007 = vmatpush1.bf16.msra.mxu1 %v953_v23  ;;  %v943_v35 = vmax.f32 %v917_v27, 0.0  ;;  %v1069_v27 = vld [vmem:[%s2001_s7] sm:$0xf] }
 0x260   : > { %v923_v34 = vadd.f32 %v922_v33, %v826_v29  ;;  %v944_v37 = vmax.f32 %v919_v30, 0.0 }
 0x261   : > { %v945_v36 = vmax.f32 %v921_v32, 0.0 }
 0x262   : > { %v946_v38 = vmax.f32 %v923_v34, 0.0 }
 0x263   : > { %v955_v39 = vpack.c.bf16 %v945_v36, %v943_v35 }
 0x264   : > { %v956_v41 = vpack.c.bf16 %v946_v38, %v944_v37  ;;  %v926_v42 = vpop.f32.mrb[12].mxu1 }
 0x265   : > { %v927_v43 = vadd.f32 %v926_v42, %v831_v40  ;;  %v928_v44 = vpop.f32.mrb[13].mxu1 }
 0x266   : > { %v929_v46 = vadd.f32 %v928_v44, %v831_v40  ;;  %v930_v47 = vpop.f32.mrb[14].mxu1  ;;  %1008 = vmatprep.subr.bf16.mxu1 %v956_v41 }
 0x267   : > { %v931_v48 = vadd.f32 %v930_v47, %v836_v45  ;;  %v932_v49 = vpop.f32.mrb[15].mxu1  ;;  %1009 = vmatpush1.bf16.msra.mxu1 %v955_v39  ;;  %v947_v51 = vmax.f32 %v927_v43, 0.0 }
 0x268   : > { %v933_v50 = vadd.f32 %v932_v49, %v836_v45  ;;  %v948_v53 = vmax.f32 %v929_v46, 0.0 }
 0x269   : > { %v949_v52 = vmax.f32 %v931_v48, 0.0 }
 0x26a   : > { %v950_v54 = vmax.f32 %v933_v50, 0.0 }
 0x26b   : > { %v957_v55 = vpack.c.bf16 %v949_v52, %v947_v51 }
 0x26c   : > { %v958_v56 = vpack.c.bf16 %v950_v54, %v948_v53 }
 0x26e   : > { %1010 = vmatprep.subr.bf16.mxu1 %v958_v56 }
 0x26f   : > { %1011 = vmatpush1.bf16.msra.mxu1 %v957_v55 }
 0x272   : > { %1305 = vmatmul.mubr.msk.bf16.vlgmr.msra.gmra.mrb[16].mxu1 %vm997_vm1, %v1431_v57 }
 0x273   : > { %1046 = vmatprep.mubr.bf16.mxu1 %v1575_v0 }
 0x27a   : > { %1306 = vmatmul.mubr.msk.bf16.gmra.mrb[20].mxu1 %vm997_vm1, %v1432_v58 }
 0x27b   : > { %1112 = vmatprep.mubr.bf16.mxu1 %v1575_v0 }
 0x345   : > { %v1038_v60 = vpop.f32.mrb[16].mxu1 }
 0x346   : > { %v1039_v61 = vadd.f32 %v1038_v60, %v970_v59  ;;  %v1040_v62 = vpop.f32.mrb[17].mxu1 }
 0x347   : > { %v1041_v1 = vadd.f32 %v1040_v62, %v970_v59  ;;  %v1042_v2 = vpop.f32.mrb[18].mxu1 }
 0x348   : > { %v1043_v3 = vadd.f32 %v1042_v2, %v975_v63  ;;  %v1044_v4 = vpop.f32.mrb[19].mxu1  ;;  %v1057_v6 = vmax.f32 %v1039_v61, 0.0 }
 0x349   : > { %v1045_v5 = vadd.f32 %v1044_v4, %v975_v63  ;;  %v1058_v8 = vmax.f32 %v1041_v1, 0.0 }
 0x34a   : > { %v1059_v7 = vmax.f32 %v1043_v3, 0.0 }
 0x34b   : > { %v1060_v9 = vmax.f32 %v1045_v5, 0.0 }
 0x34c   : > { %v1065_v10 = vpack.c.bf16 %v1059_v7, %v1057_v6 }
 0x34d   : > { %v1066_v12 = vpack.c.bf16 %v1060_v9, %v1058_v8  ;;  %v1048_v13 = vpop.f32.mrb[20].mxu1 }
 0x34e   : > { %v1049_v14 = vadd.f32 %v1048_v13, %v980_v11  ;;  %v1050_v0 = vpop.f32.mrb[21].mxu1 }
 0x34f   : > { %v1051_v16 = vadd.f32 %v1050_v0, %v980_v11  ;;  %v1052_v17 = vpop.f32.mrb[22].mxu1  ;;  %1080 = vmatprep.subr.bf16.mxu1 %v1066_v12 }
 0x350   : > { %v1053_v18 = vadd.f32 %v1052_v17, %v985_v15  ;;  %v1054_v19 = vpop.f32.mrb[23].mxu1  ;;  %1081 = vmatpush1.bf16.msra.mxu1 %v1065_v10  ;;  %v1061_v21 = vmax.f32 %v1049_v14, 0.0 }
 0x351   : > { %v1055_v20 = vadd.f32 %v1054_v19, %v985_v15  ;;  %v1062_v23 = vmax.f32 %v1051_v16, 0.0 }
 0x352   : > { %v1063_v22 = vmax.f32 %v1053_v18, 0.0 }
 0x353   : > { %v1064_v24 = vmax.f32 %v1055_v20, 0.0 }
 0x354   : > { %v1067_v25 = vpack.c.bf16 %v1063_v22, %v1061_v21 }
 0x355   : > { %v1068_v26 = vpack.c.bf16 %v1064_v24, %v1062_v23 }
 0x357   : > { %1082 = vmatprep.subr.bf16.mxu1 %v1068_v26 }
 0x358   : > { %1083 = vmatpush1.bf16.msra.mxu1 %v1067_v25 }
 0x35b   : > { %1307 = vmatmul.mubr.msk.bf16.vlgmr.msra.gmra.mrb[24].mxu1 %vm1076_vm2, %v1069_v27 }
 0x42e   : > { %v1114_v29 = vpop.f32.mrb[24].mxu1 }
 0x42f   : > { %v1115_v30 = vadd.f32 %v1114_v29, %v1074_v28  ;;  %v1116_v31 = vpop.f32.mrb[25].mxu1 }
 0x430   : > { %v1117_v32 = vadd.f32 %v1116_v31, %v1074_v28  ;;  %v1118_v33 = vpop.f32.mrb[26].mxu1 }
 0x431   : > { %v1121_v34 = vrot.slane %v1115_v30, 4  ;;  %v1119_v35 = vpop.f32.mrb[27].mxu1 }
 0x432   : > { %v1127_v36 = vrot.slane %v1117_v32, 4 }
 0x433   : > { %v1122_v37 = vmax.f32 %v1115_v30, %v1121_v34 }
 0x434   : > { %v1128_v38 = vmax.f32 %v1117_v32, %v1127_v36 }
 0x435   : > { %v1123_v39 = vrot.slane %v1122_v37, 2 }
 0x436   : > { %v1129_v40 = vrot.slane %v1128_v38, 2 }
 0x437   : > { %v1124_v41 = vmax.f32 %v1122_v37, %v1123_v39 }
 0x438   : > { %v1130_v42 = vmax.f32 %v1128_v38, %v1129_v40 }
 0x439   : > { %v1125_v43 = vrot.slane %v1124_v41, 1 }
 0x43a   : > { %v1131_v44 = vrot.slane %v1130_v42, 1 }
 0x43b   : > { %v1126_v45 = vmax.f32 %v1124_v41, %v1125_v43 }
 0x43c   : > { %v1132_v46 = vmax.f32 %v1130_v42, %v1131_v44 }
 0x43d   : > { %v1133_v47 = vsub.f32 %v1115_v30, %v1126_v45 }
 0x43e   : > { %v1134_v48 = vsub.f32 %v1117_v32, %v1132_v46 }
 0x43f   : > { %v1135_v49 = vmul.f32 1.442695, %v1133_v47 }
 0x440   : > { %v1137_v50 = vmul.f32 1.442695, %v1134_v48 }
 0x441   : > { %1433 = vpow2.f32 %v1135_v49 }
 0x442   : > { %1435 = vpow2.f32 %v1137_v50 }
 0x44b   : > { %v1434_v51 = vpop.eup %1433 }
 0x44c   : > { %v1436_v52 = vpop.eup %1435  ;;  %v1139_v53 = vrot.slane %v1434_v51, 4 }
 0x44d   : > { %v1145_v54 = vrot.slane %v1436_v52, 4 }
 0x44e   : > { %v1140_v55 = vadd.f32 %v1434_v51, %v1139_v53 }
 0x44f   : > { %v1146_v56 = vadd.f32 %v1436_v52, %v1145_v54 }
 0x450   : > { %v1141_v57 = vrot.slane %v1140_v55, 2 }
 0x451   : > { %v1147_v58 = vrot.slane %v1146_v56, 2 }
 0x452   : > { %v1142_v59 = vadd.f32 %v1141_v57, %v1140_v55 }
 0x453   : > { %v1148_v60 = vadd.f32 %v1147_v58, %v1146_v56 }
 0x454   : > { %v1143_v61 = vrot.slane %v1142_v59, 1 }
 0x455   : > { %v1149_v62 = vrot.slane %v1148_v60, 1 }
 0x456   : > { %v1144_v63 = vadd.f32 %v1143_v61, %v1142_v59 }
 0x457   : > { %v1150_v1 = vadd.f32 %v1149_v62, %v1148_v60 }
 0x458   : > { %1437 = vlog2.f32 %v1144_v63 }
 0x459   : > { %1439 = vlog2.f32 %v1150_v1 }
 0x462   : > { %v1438_v2 = vpop.eup %1437 }
 0x463   : > { %v1440_v3 = vpop.eup %1439  ;;  %v1152_v4 = vmul.f32 0.6931472, %v1438_v2 }
 0x464   : > { %v1154_v5 = vmul.f32 0.6931472, %v1440_v3 }
 0x465   : > { %v1155_v6 = vsub.f32 %v1133_v47, %v1152_v4 }
 0x466   : > { %v1156_v7 = vsub.f32 %v1134_v48, %v1154_v5 }
 0x467   : > { %1157 = vst [vmem:[%s368_s30] sm:$0xff] %v1155_v6 }
 0x468   : > { %1158 = vst [vmem:[%s368_s30 + $0x8] sm:$0xff] %v1156_v7 }
 0x469   : > { %1484 = shalt.err (!%p1481_p4)
}
 0x46a   : > { %s1485_s19 = scalar_lea.hbm %s1940_s29, 256  ;;  %s1489_s15 = scalar_lea.hbm %s2025_s24, 2048 }
 0x46b   : > { %p1486_p6 = scmp.ne.s32.totalorder %s1940_s29, %s1485_s19  ;;  %p1490_p1 = scmp.lt.u32.totalorder %s1940_s29, %s2025_s24 }
 0x46c   : > { %p1491_p3 = scmp.lt.u32.totalorder %s1489_s15, %s1485_s19  ;;  %p1493_p8 = scmp.lt.u32.totalorder %s1485_s19, %s1940_s29 }
 0x46d   : > { %p1487_p7 = pnand %p1486_p6, %p2026_p9 }
 0x46e   : > { %p1492_p5 = por %p1491_p3, %p1490_p1 }
 0x46f   : > { %p1488_p10 = pneg %p1487_p7 }
 0x470   : > { %p1494_p12 = por %p1493_p8, %p1492_p5 }
 0x472   : > { %p1495_p0 = pnand %p1494_p12, %p1488_p10 }
 0x474   : > { %1498 = shalt.err (!%p1495_p0)
}
 0x475   : > { %1319 = dma.vmem_to_hbm [thread:$0]  (%p2026_p9), %s1942_s20, 256, %s1940_s29, %s1160_s12  }
 0x476 PF: > { %s2027_s28 = sld [smem:[#allocation8_spill]]  ;;  %s2028_s13 = sld [smem:[#allocation13_spill]] }
 0x477   : > { %p1330_p11 = scmp.ge.s32.totalorder %s1569_s16, 2 }
 0x47c   : > { %s1188_s26 = sand.u32 1, %s2027_s28   ;;  %p2029_p13 = scmp.ne.s32.totalorder %s2028_s13, 0 }
 0x47d   : > { %s1189_s21 = scalar_lea.sflag [#allocation4], %s1188_s26 }
 0x47e   : > { %p1326_p2 = pnand %p1330_p11, %p2029_p13 }
 0x480   : > { %1536 = dma.done.wait (!%p1326_p2), %s1189_s21, 256  }
 0x481   : > { %1538 = vsyncadd (!%p1326_p2), %s1189_s21, 4294967040  ;;  %s25_s16 = sadd.s32 1, %s1569_s16   ;;  %s2030_s13 = sld [smem:[#allocation10_spill]] }
 0x482   : > { %p22_p4 = scmp.ge.s32.totalorder %s25_s16, 10   ;;  %s2031_s25 = sld [smem:[#allocation11_spill]] }
 0x483   : > { %s2032_s15 = sld [smem:[#allocation12_spill]]  ;;  %s2033_s30 = smov %s1545_s10 }
 0x484   : > { %s2034_s10 = smov %s1549_s11  ;;  %s2035_s11 = smov %s1705_s17 }
 0x485   : > { %s2036_s12 = smov %s1561_s14  ;;  %24 = sbr.rel (!%p22_p4) target bundleno = 9 (0x9), region = 101 }
 0x488   : > { %s2037_s14 = smov %s2031_s25 }
 0x48c   :  { %1194 = vsyncpa [#allocation3], 1 }
 0x48d   :  { %1196 = vsyncpa [#allocation3 + $0x1], 1 }
 0x48e   :  { %1197 = vsyncpa [#allocation4], 1 }
 0x48f   :  { %1199 = vsyncpa [#allocation4 + $0x1], 1 }

</bundles_post_ra>
